<compile_context>
chip_gen: v6e
topology: v6e:2x2x1
jax: 0.10.0
libtpu: 0.0.40
codegen_flags: <defaults>
</compile_context>

<pallas_src>
import jax
import jax.numpy as jnp
from jax.experimental import pallas as pl
from jax.experimental.pallas import tpu as pltpu


# --------------------------------------------------------------------------
# helpers
# --------------------------------------------------------------------------
def _silu(x):
    return x * jax.nn.sigmoid(x)


def _full_spec(shape):
    nd = len(shape)
    return pl.BlockSpec(shape, lambda i, nd=nd: (0,) * nd)


_VMEM_LIMIT = 32 * 1024 * 1024   # explicit scoped-VMEM limit (safe on v5e/v6e/v7x)


# --------------------------------------------------------------------------
# Pallas kernels
# --------------------------------------------------------------------------
def _fused_egcl_kernel(h0_ref, radial_ref, gcat_ref, eattr_ref, emask_ref,
                       wemb_ref, bemb_ref,
                       w1a_ref, w1b_ref, w1r_ref, w1e_ref, b1_ref,
                       w2_ref, b2_ref,
                       w3a_ref, w3b_ref, w3c_ref, b3_ref,
                       w4_ref, b4_ref,
                       h_ref):
    """grid = (stream, layer).  One E_GCL_mask layer per invocation.

    h_ref is the resident accumulator: same output block for every layer of a
    stream, initialised with the stream embedding at layer 0.
    """
    f32 = jnp.float32
    bf16 = jnp.bfloat16
    l = pl.program_id(1)

    # --- layer 0: h = embedding(h0) -------------------------------------
    @pl.when(l == 0)
    def _():
        h_ref[...] = (jnp.dot(h0_ref[...], wemb_ref[...],
                              preferred_element_type=f32) + bemb_ref[...])

    h = h_ref[...]                                     # [N, H] f32
    gcat = gcat_ref[...]                               # [2E, N] bf16 (rows ; cols)
    E = gcat.shape[0] // 2

    # --- gather node features onto edges: one [2E,N]@[N,H] MXU matmul ----
    h_gather = jnp.dot(gcat, h.astype(bf16), preferred_element_type=f32)
    h_row = h_gather[:E]                               # [E, H]
    h_col = h_gather[E:]                               # [E, H]

    # --- edge_model: edge_mlp(cat[h_row, h_col, radial, edge_attr]) ------
    e1 = (jnp.dot(h_row, w1a_ref[...], preferred_element_type=f32)
          + jnp.dot(h_col, w1b_ref[...], preferred_element_type=f32)
          + radial_ref[...] * w1r_ref[...]
          + jnp.dot(eattr_ref[...], w1e_ref[...], preferred_element_type=f32)
          + b1_ref[...])
    e1 = _silu(e1)
    edge_feat = _silu(jnp.dot(e1, w2_ref[...], preferred_element_type=f32)
                      + b2_ref[...])
    edge_feat = edge_feat * emask_ref[...]             # edge mask

    # --- unsorted_segment_sum(edge_feat, row, N): contract the edge axis
    #     of g_row (= gcat[:E]) directly; no transposed copy materialised.
    agg = jax.lax.dot_general(
        gcat[:E], edge_feat.astype(bf16),
        dimension_numbers=(((0,), (0,)), ((), ())),
        preferred_element_type=f32)                    # [N, H]

    # --- node_model: node_mlp(cat[h, agg, h0]) with recurrent residual ---
    n1 = (jnp.dot(h, w3a_ref[...], preferred_element_type=f32)
          + jnp.dot(agg, w3b_ref[...], preferred_element_type=f32)
          + jnp.dot(h0_ref[...], w3c_ref[...], preferred_element_type=f32)
          + b3_ref[...])
    n1 = _silu(n1)
    out = jnp.dot(n1, w4_ref[...], preferred_element_type=f32) + b4_ref[...]
    h_ref[...] = h + out                               # recurrent=True


def _epilogue_kernel(h_ref, nmask_ref, pool_ref,
                     wd1_ref, bd1_ref, wd2_ref, bd2_ref,
                     wg1a_ref, wg1b_ref, bg1_ref, wg2_ref, bg2_ref,
                     out_ref):
    """node_dec (both streams) + node mask + per-graph sum pool + graph_dec."""
    f32 = jnp.float32

    def decode(s):
        hd = _silu(jnp.dot(h_ref[s], wd1_ref[s], preferred_element_type=f32)
                   + bd1_ref[s])
        hd = jnp.dot(hd, wd2_ref[s], preferred_element_type=f32) + bd2_ref[s]
        hd = hd * nmask_ref[s]
        return jnp.dot(pool_ref[s], hd, preferred_element_type=f32)   # [B, H]

    hs = decode(0)
    ht = decode(1)
    # graph_dec(cat[h_s, h_t]) : Linear(2H,2H) -> SiLU -> Linear(2H,1)
    g1 = _silu(jnp.dot(hs, wg1a_ref[...], preferred_element_type=f32)
               + jnp.dot(ht, wg1b_ref[...], preferred_element_type=f32)
               + bg1_ref[...])
    out_ref[...] = (jnp.dot(g1, wg2_ref[...], preferred_element_type=f32)
                    + bg2_ref[...])


# --------------------------------------------------------------------------
# parameter construction (deterministic, PyTorch-style uniform init)
# --------------------------------------------------------------------------
def _init_linear(key, fan_in, fan_out):
    kw, kb = jax.random.split(key)
    bound = 1.0 / (fan_in ** 0.5)
    w = jax.random.uniform(kw, (fan_in, fan_out), jnp.float32, -bound, bound)
    b = jax.random.uniform(kb, (1, fan_out), jnp.float32, -bound, bound)
    return w, b


_LAYER_KEYS = ["w1a", "w1b", "w1r", "w1e", "b1", "w2", "b2",
               "w3a", "w3b", "w3c", "b3", "w4", "b4"]


class PairEGNNPallas:
    def __init__(self, in_node_nf, in_edge_nf, hidden_nf, n_layers=4,
                 coords_weight=1.0, node_attr=1, key=None):
        assert node_attr == 1, "this build uses node_attr=1 (default)"
        self.H, self.F0, self.EA = hidden_nf, in_node_nf, in_edge_nf
        self.n_layers = n_layers
        H, F0, EA, L = hidden_nf, in_node_nf, in_edge_nf, n_layers

        keys = iter(jax.random.split(key, 8 + 8 * n_layers + 16))

        emb_s = _init_linear(next(keys), F0, H)
        emb_t = _init_linear(next(keys), F0, H)
        self.wemb = jnp.stack([emb_s[0], emb_t[0]])            # [2, F0, H]
        self.bemb = jnp.stack([emb_s[1], emb_t[1]])            # [2, 1, H]

        def make_gcl():
            w1, b1 = _init_linear(next(keys), 2 * H + 1 + EA, H)   # edge_mlp[0]
            w2, b2 = _init_linear(next(keys), H, H)                # edge_mlp[2]
            w3, b3 = _init_linear(next(keys), 2 * H + F0, H)       # node_mlp[0]
            w4, b4 = _init_linear(next(keys), H, H)                # node_mlp[2]
            return dict(w1a=w1[:H], w1b=w1[H:2 * H], w1r=w1[2 * H:2 * H + 1],
                        w1e=w1[2 * H + 1:], b1=b1, w2=w2, b2=b2,
                        w3a=w3[:H], w3b=w3[H:2 * H], w3c=w3[2 * H:], b3=b3,
                        w4=w4, b4=b4)

        gcl_s = [make_gcl() for _ in range(L)]
        gcl_t = [make_gcl() for _ in range(L)]
        # stacked [2 streams, L layers, ...]
        self.gcl = {k: jnp.stack([jnp.stack([p[k] for p in gcl_s]),
                                  jnp.stack([p[k] for p in gcl_t])])
                    for k in _LAYER_KEYS}

        dec_s = (_init_linear(next(keys), H, H), _init_linear(next(keys), H, H))
        dec_t = (_init_linear(next(keys), H, H), _init_linear(next(keys), H, H))
        self.wd1 = jnp.stack([dec_s[0][0], dec_t[0][0]])       # [2, H, H]
        self.bd1 = jnp.stack([dec_s[0][1], dec_t[0][1]])       # [2, 1, H]
        self.wd2 = jnp.stack([dec_s[1][0], dec_t[1][0]])
        self.bd2 = jnp.stack([dec_s[1][1], dec_t[1][1]])

        wg1, bg1 = _init_linear(next(keys), 2 * H, 2 * H)
        wg2, bg2 = _init_linear(next(keys), 2 * H, 1)
        self.wg1a, self.wg1b, self.bg1 = wg1[:H], wg1[H:], bg1
        self.wg2, self.bg2 = wg2, bg2

    # ---------------- full forward ----------------
    def forward(self, h0_s, h0_t, edges_s, edges_t, edge_attr,
                node_mask_s, edge_mask_s, n_nodes_s,
                node_mask_t, edge_mask_t, n_nodes_t, x_s, x_t):
        H, F0, L = self.H, self.F0, self.n_layers
        N_s, N_t = h0_s.shape[0], h0_t.shape[0]
        E_s, E_t = edges_s[0].shape[0], edges_t[0].shape[0]
        # Stacked two-stream kernel assumes matching graph sizes (true here).
        # TODO(synk): pad the smaller stream to support unequal s/t graph sizes.
        assert N_s == N_t and E_s == E_t and n_nodes_s == n_nodes_t
        N, E = N_s, E_s

        # ---- plain-JAX glue: one-hot gather matrices (bf16 exact) + radial ----
        def prep(edges, x):
            g_row = jax.nn.one_hot(edges[0], N, dtype=jnp.bfloat16)   # [E, N]
            g_col = jax.nn.one_hot(edges[1], N, dtype=jnp.bfloat16)   # [E, N]
            gcat = jnp.concatenate([g_row, g_col], axis=0)            # [2E, N]
            diff = x[edges[0]] - x[edges[1]]
            radial = jnp.sum(diff * diff, axis=-1, keepdims=True)     # [E, 1]
            return gcat, radial.astype(jnp.float32)

        gcat_s, radial_s = prep(edges_s, x_s)
        gcat_t, radial_t = prep(edges_t, x_t)

        h0 = jnp.stack([h0_s, h0_t])                       # [2, N, F0]
        radial = jnp.stack([radial_s, radial_t])           # [2, E, 1]
        gcat = jnp.stack([gcat_s, gcat_t])                 # [2, 2E, N] bf16
        emask = jnp.stack([edge_mask_s, edge_mask_t])      # [2, E, 1]
        nmask = jnp.stack([node_mask_s, node_mask_t])      # [2, N, 1]

        # ---- fused embedding + n_layers EGCL stack, both streams ----
        def stream_spec(shape):      # [2, a, b] resident per stream
            return pl.BlockSpec((None,) + shape[1:], lambda s, l: (s, 0, 0))

        def shared_spec(shape):      # shared across streams & layers
            nd = len(shape)
            return pl.BlockSpec(shape, lambda s, l, nd=nd: (0,) * nd)

        def layer_spec(shape):       # [2, L, a, b] per-stream per-layer weight
            return pl.BlockSpec((None, None) + shape[2:],
                                lambda s, l: (s, l, 0, 0))

        layer_args = [self.gcl[k] for k in _LAYER_KEYS]
        in_arrays = [h0, radial, gcat, edge_attr, emask,
                     self.wemb, self.bemb] + layer_args
        in_specs = ([stream_spec(h0.shape), stream_spec(radial.shape),
                     stream_spec(gcat.shape), shared_spec(edge_attr.shape),
                     stream_spec(emask.shape), stream_spec(self.wemb.shape),
                     stream_spec(self.bemb.shape)]
                    + [layer_spec(a.shape) for a in layer_args])

        h = pl.pallas_call(
            _fused_egcl_kernel,
            out_shape=jax.ShapeDtypeStruct((2, N, H), jnp.float32),
            grid=(2, L),
            in_specs=in_specs,
            out_specs=pl.BlockSpec((None, N, H), lambda s, l: (s, 0, 0)),
            compiler_params=pltpu.CompilerParams(
                dimension_semantics=("parallel", "arbitrary"),
                vmem_limit_bytes=_VMEM_LIMIT),
        )(*in_arrays)

        # ---- fused epilogue: node decoders + masked pooling + graph decoder ----
        B = N // int(n_nodes_s)
        pool_row = (jnp.arange(B)[:, None]
                    == (jnp.arange(N)[None, :] // int(n_nodes_s))
                    ).astype(jnp.float32)                  # [B, N]
        pool = jnp.stack([pool_row, pool_row])             # [2, B, N]

        ep_inputs = [h, nmask, pool,
                     self.wd1, self.bd1, self.wd2, self.bd2,
                     self.wg1a, self.wg1b, self.bg1, self.wg2, self.bg2]
        pred = pl.pallas_call(
            _epilogue_kernel,
            out_shape=jax.ShapeDtypeStruct((B, 1), jnp.float32),
            grid=(1,),
            in_specs=[_full_spec(a.shape) for a in ep_inputs],
            out_specs=_full_spec((B, 1)),
            compiler_params=pltpu.CompilerParams(
                dimension_semantics=("arbitrary",),
                vmem_limit_bytes=_VMEM_LIMIT),
        )(*ep_inputs)
        return pred[:, 0]                                  # squeeze(1)


# --------------------------------------------------------------------------
# main
# --------------------------------------------------------------------------
if __name__ == "__main__":
    key = jax.random.PRNGKey(0)
    k_model, k_hs, k_ht, k_xs, k_xt, k_ea = jax.random.split(key, 6)

    in_node_nf, in_edge_nf, hidden_nf, n_layers = 4, 2, 32, 4
    B, n_nodes = 2, 8
    N = B * n_nodes

    # fully-connected edges (no self loops) within each graph
    rows, cols = [], []
    for b in range(B):
        for i in range(n_nodes):
            for j in range(n_nodes):
                if i != j:
                    rows.append(b * n_nodes + i)
                    cols.append(b * n_nodes + j)
    rows = jnp.asarray(rows, jnp.int32)
    cols = jnp.asarray(cols, jnp.int32)
    E = rows.shape[0]                                      # 112

    h0_s = jax.random.normal(k_hs, (N, in_node_nf), jnp.float32)
    h0_t = jax.random.normal(k_ht, (N, in_node_nf), jnp.float32)
    x_s = jax.random.normal(k_xs, (N, 3), jnp.float32)
    x_t = jax.random.normal(k_xt, (N, 3), jnp.float32)
    edge_attr = jax.random.normal(k_ea, (E, in_edge_nf), jnp.float32)

    # mask out the last node of each graph (and its incident edges)
    nmask = jnp.ones((N,), jnp.float32)
    nmask = nmask.at[jnp.arange(B) * n_nodes + (n_nodes - 1)].set(0.0)
    node_mask_s = nmask[:, None]
    node_mask_t = nmask[:, None]
    emask = (nmask[rows] * nmask[cols])[:, None]
    edge_mask_s = emask
    edge_mask_t = emask

    model = PairEGNNPallas(in_node_nf, in_edge_nf, hidden_nf,
                           n_layers=n_layers, key=k_model)

    pred = model.forward(h0_s, h0_t, (rows, cols), (rows, cols), edge_attr,
                         node_mask_s, edge_mask_s, n_nodes,
                         node_mask_t, edge_mask_t, n_nodes, x_s, x_t)
    jax.block_until_ready(pred)
    assert pred.shape == (B,)
    print("KERNEL_OK")
</pallas_src>

<mosaic_0001>
module attributes {stable_mosaic.version = 11 : i64} {
  func.func @_fused_egcl_kernel(%arg0: i32, %arg1: i32, %arg2: memref<1x16x4xf32, #tpu.memory_space<vmem>>, %arg3: memref<1x112x1xf32, #tpu.memory_space<vmem>>, %arg4: memref<1x224x16xbf16, #tpu.memory_space<vmem>>, %arg5: memref<112x2xf32, #tpu.memory_space<vmem>>, %arg6: memref<1x112x1xf32, #tpu.memory_space<vmem>>, %arg7: memref<1x4x32xf32, #tpu.memory_space<vmem>>, %arg8: memref<1x1x32xf32, #tpu.memory_space<vmem>>, %arg9: memref<1x1x32x32xf32, #tpu.memory_space<vmem>>, %arg10: memref<1x1x32x32xf32, #tpu.memory_space<vmem>>, %arg11: memref<1x1x1x32xf32, #tpu.memory_space<vmem>>, %arg12: memref<1x1x2x32xf32, #tpu.memory_space<vmem>>, %arg13: memref<1x1x1x32xf32, #tpu.memory_space<vmem>>, %arg14: memref<1x1x32x32xf32, #tpu.memory_space<vmem>>, %arg15: memref<1x1x1x32xf32, #tpu.memory_space<vmem>>, %arg16: memref<1x1x32x32xf32, #tpu.memory_space<vmem>>, %arg17: memref<1x1x32x32xf32, #tpu.memory_space<vmem>>, %arg18: memref<1x1x4x32xf32, #tpu.memory_space<vmem>>, %arg19: memref<1x1x1x32xf32, #tpu.memory_space<vmem>>, %arg20: memref<1x1x32x32xf32, #tpu.memory_space<vmem>>, %arg21: memref<1x1x1x32xf32, #tpu.memory_space<vmem>>, %arg22: memref<1x16x32xf32, #tpu.memory_space<vmem>>) attributes {dimension_semantics = [#tpu.dimension_semantics<parallel>, #tpu.dimension_semantics<arbitrary>], iteration_bounds = array<i64: 2, 4>, scalar_prefetch = 0 : i64, scratch_operands = 0 : i64, tpu.core_type = #tpu.core_type<tc>, window_params = [{transform_indices = @transform_0, window_bounds = array<i64: 1, 16, 4>}, {transform_indices = @transform_1, window_bounds = array<i64: 1, 112, 1>}, {transform_indices = @transform_2, window_bounds = array<i64: 1, 224, 16>}, {pipeline_mode = #tpu.pipeline_mode<synchronous>, transform_indices = @transform_3, window_bounds = array<i64: 112, 2>}, {transform_indices = @transform_4, window_bounds = array<i64: 1, 112, 1>}, {transform_indices = @transform_5, window_bounds = array<i64: 1, 4, 32>}, {transform_indices = @transform_6, window_bounds = array<i64: 1, 1, 32>}, {transform_indices = @transform_7, window_bounds = array<i64: 1, 1, 32, 32>}, {transform_indices = @transform_8, window_bounds = array<i64: 1, 1, 32, 32>}, {transform_indices = @transform_9, window_bounds = array<i64: 1, 1, 1, 32>}, {transform_indices = @transform_10, window_bounds = array<i64: 1, 1, 2, 32>}, {transform_indices = @transform_11, window_bounds = array<i64: 1, 1, 1, 32>}, {transform_indices = @transform_12, window_bounds = array<i64: 1, 1, 32, 32>}, {transform_indices = @transform_13, window_bounds = array<i64: 1, 1, 1, 32>}, {transform_indices = @transform_14, window_bounds = array<i64: 1, 1, 32, 32>}, {transform_indices = @transform_15, window_bounds = array<i64: 1, 1, 32, 32>}, {transform_indices = @transform_16, window_bounds = array<i64: 1, 1, 4, 32>}, {transform_indices = @transform_17, window_bounds = array<i64: 1, 1, 1, 32>}, {transform_indices = @transform_18, window_bounds = array<i64: 1, 1, 32, 32>}, {transform_indices = @transform_19, window_bounds = array<i64: 1, 1, 1, 32>}, {transform_indices = @transform_20, window_bounds = array<i64: 1, 16, 32>}]} {
    %c0_i32 = arith.constant 0 : i32
    %0 = arith.cmpi eq, %arg1, %c0_i32 : i32
    %1 = arith.extui %0 : i1 to i32
    %c0_i32_0 = arith.constant 0 : i32
    %2 = arith.cmpi ne, %1, %c0_i32_0 : i32
    scf.if %2 {
      %c0_84 = arith.constant 0 : index
      %c0_85 = arith.constant 0 : index
      %c0_86 = arith.constant 0 : index
      %95 = vector.load %arg2[%c0_84, %c0_85, %c0_86] : memref<1x16x4xf32, #tpu.memory_space<vmem>>, vector<1x16x4xf32>
      %96 = vector.shape_cast %95 : vector<1x16x4xf32> to vector<16x4xf32>
      %c0_87 = arith.constant 0 : index
      %c0_88 = arith.constant 0 : index
      %c0_89 = arith.constant 0 : index
      %97 = vector.load %arg7[%c0_87, %c0_88, %c0_89] : memref<1x4x32xf32, #tpu.memory_space<vmem>>, vector<1x4x32xf32>
      %98 = vector.shape_cast %97 : vector<1x4x32xf32> to vector<4x32xf32>
      %cst_90 = arith.constant dense<0.000000e+00> : vector<16x32xf32>
      %99 = tpu.matmul %96, %98, %cst_90 {dimension_numbers = #tpu.dot_dimension_numbers<[1], [0], [0], [1], [0, 0, 1, 1], [], []>} : vector<16x4xf32>, vector<4x32xf32>, vector<16x32xf32> -> vector<16x32xf32>
      %c0_91 = arith.constant 0 : index
      %c0_92 = arith.constant 0 : index
      %c0_93 = arith.constant 0 : index
      %100 = vector.load %arg8[%c0_91, %c0_92, %c0_93] : memref<1x1x32xf32, #tpu.memory_space<vmem>>, vector<1x1x32xf32>
      %101 = vector.shape_cast %100 : vector<1x1x32xf32> to vector<1x32xf32>
      %102 = vector.broadcast %101 : vector<1x32xf32> to vector<16x32xf32>
      %103 = arith.addf %99, %102 : vector<16x32xf32>
      %c0_94 = arith.constant 0 : index
      %c0_95 = arith.constant 0 : index
      %c0_96 = arith.constant 0 : index
      %104 = vector.load %arg22[%c0_94, %c0_95, %c0_96] : memref<1x16x32xf32, #tpu.memory_space<vmem>>, vector<1x16x32xf32>
      %105 = vector.shape_cast %104 : vector<1x16x32xf32> to vector<16x32xf32>
      %106 = vector.shape_cast %103 : vector<16x32xf32> to vector<1x16x32xf32>
      tpu.vector_store %arg22[%c0_94, %c0_95, %c0_96], %106 {strides = array<i32>} : memref<1x16x32xf32, #tpu.memory_space<vmem>>, vector<1x16x32xf32>,
    } else {
    }
    %c0 = arith.constant 0 : index
    %c0_1 = arith.constant 0 : index
    %c0_2 = arith.constant 0 : index
    %3 = vector.load %arg22[%c0, %c0_1, %c0_2] : memref<1x16x32xf32, #tpu.memory_space<vmem>>, vector<1x16x32xf32>
    %4 = vector.shape_cast %3 : vector<1x16x32xf32> to vector<16x32xf32>
    %c0_3 = arith.constant 0 : index
    %c0_4 = arith.constant 0 : index
    %c0_5 = arith.constant 0 : index
    %5 = vector.load %arg4[%c0_3, %c0_4, %c0_5] : memref<1x224x16xbf16, #tpu.memory_space<vmem>>, vector<1x224x16xbf16>
    %6 = vector.shape_cast %5 : vector<1x224x16xbf16> to vector<224x16xbf16>
    %7 = arith.truncf %4 : vector<16x32xf32> to vector<16x32xbf16>
    %cst = arith.constant dense<0.000000e+00> : vector<224x32xf32>
    %8 = tpu.matmul %6, %7, %cst {dimension_numbers = #tpu.dot_dimension_numbers<[1], [0], [0], [1], [0, 0, 1, 1], [], []>} : vector<224x16xbf16>, vector<16x32xbf16>, vector<224x32xf32> -> vector<224x32xf32>
    %9 = vector.extract_strided_slice %8 {offsets = [0, 0], sizes = [112, 32], strides = [1, 1]} : vector<224x32xf32> to vector<112x32xf32>
    %10 = vector.extract_strided_slice %8 {offsets = [112, 0], sizes = [112, 32], strides = [1, 1]} : vector<224x32xf32> to vector<112x32xf32>
    %c0_6 = arith.constant 0 : index
    %c0_7 = arith.constant 0 : index
    %c0_8 = arith.constant 0 : index
    %c0_9 = arith.constant 0 : index
    %11 = vector.load %arg9[%c0_6, %c0_7, %c0_8, %c0_9] : memref<1x1x32x32xf32, #tpu.memory_space<vmem>>, vector<1x1x32x32xf32>
    %12 = vector.shape_cast %11 : vector<1x1x32x32xf32> to vector<32x32xf32>
    %cst_10 = arith.constant dense<0.000000e+00> : vector<112x32xf32>
    %13 = tpu.matmul %9, %12, %cst_10 {dimension_numbers = #tpu.dot_dimension_numbers<[1], [0], [0], [1], [0, 0, 1, 1], [], []>} : vector<112x32xf32>, vector<32x32xf32>, vector<112x32xf32> -> vector<112x32xf32>
    %c0_11 = arith.constant 0 : index
    %c0_12 = arith.constant 0 : index
    %c0_13 = arith.constant 0 : index
    %c0_14 = arith.constant 0 : index
    %14 = vector.load %arg10[%c0_11, %c0_12, %c0_13, %c0_14] : memref<1x1x32x32xf32, #tpu.memory_space<vmem>>, vector<1x1x32x32xf32>
    %15 = vector.shape_cast %14 : vector<1x1x32x32xf32> to vector<32x32xf32>
    %cst_15 = arith.constant dense<0.000000e+00> : vector<112x32xf32>
    %16 = tpu.matmul %10, %15, %cst_15 {dimension_numbers = #tpu.dot_dimension_numbers<[1], [0], [0], [1], [0, 0, 1, 1], [], []>} : vector<112x32xf32>, vector<32x32xf32>, vector<112x32xf32> -> vector<112x32xf32>
    %17 = arith.addf %13, %16 : vector<112x32xf32>
    %c0_16 = arith.constant 0 : index
    %c0_17 = arith.constant 0 : index
    %c0_18 = arith.constant 0 : index
    %18 = vector.load %arg3[%c0_16, %c0_17, %c0_18] : memref<1x112x1xf32, #tpu.memory_space<vmem>>, vector<1x112x1xf32>
    %19 = vector.shape_cast %18 : vector<1x112x1xf32> to vector<112x1xf32>
    %c0_19 = arith.constant 0 : index
    %c0_20 = arith.constant 0 : index
    %c0_21 = arith.constant 0 : index
    %c0_22 = arith.constant 0 : index
    %20 = vector.load %arg11[%c0_19, %c0_20, %c0_21, %c0_22] : memref<1x1x1x32xf32, #tpu.memory_space<vmem>>, vector<1x1x1x32xf32>
    %21 = vector.shape_cast %20 : vector<1x1x1x32xf32> to vector<1x32xf32>
    %22 = vector.broadcast %19 : vector<112x1xf32> to vector<112x32xf32>
    %23 = vector.broadcast %21 : vector<1x32xf32> to vector<112x32xf32>
    %24 = arith.mulf %22, %23 : vector<112x32xf32>
    %25 = arith.addf %17, %24 : vector<112x32xf32>
    %c0_23 = arith.constant 0 : index
    %c0_24 = arith.constant 0 : index
    %26 = vector.load %arg5[%c0_23, %c0_24] : memref<112x2xf32, #tpu.memory_space<vmem>>, vector<112x2xf32>
    %c0_25 = arith.constant 0 : index
    %c0_26 = arith.constant 0 : index
    %c0_27 = arith.constant 0 : index
    %c0_28 = arith.constant 0 : index
    %27 = vector.load %arg12[%c0_25, %c0_26, %c0_27, %c0_28] : memref<1x1x2x32xf32, #tpu.memory_space<vmem>>, vector<1x1x2x32xf32>
    %28 = vector.shape_cast %27 : vector<1x1x2x32xf32> to vector<2x32xf32>
    %cst_29 = arith.constant dense<0.000000e+00> : vector<112x32xf32>
    %29 = tpu.matmul %26, %28, %cst_29 {dimension_numbers = #tpu.dot_dimension_numbers<[1], [0], [0], [1], [0, 0, 1, 1], [], []>} : vector<112x2xf32>, vector<2x32xf32>, vector<112x32xf32> -> vector<112x32xf32>
    %30 = arith.addf %25, %29 : vector<112x32xf32>
    %c0_30 = arith.constant 0 : index
    %c0_31 = arith.constant 0 : index
    %c0_32 = arith.constant 0 : index
    %c0_33 = arith.constant 0 : index
    %31 = vector.load %arg13[%c0_30, %c0_31, %c0_32, %c0_33] : memref<1x1x1x32xf32, #tpu.memory_space<vmem>>, vector<1x1x1x32xf32>
    %32 = vector.shape_cast %31 : vector<1x1x1x32xf32> to vector<1x32xf32>
    %33 = vector.broadcast %32 : vector<1x32xf32> to vector<112x32xf32>
    %34 = arith.addf %30, %33 : vector<112x32xf32>
    %35 = arith.negf %34 : vector<112x32xf32>
    %36 = math.exp %35 : vector<112x32xf32>
    %cst_34 = arith.constant 1.000000e+00 : f32
    %37 = vector.broadcast %cst_34 : f32 to vector<112x32xf32>
    %38 = arith.addf %37, %36 : vector<112x32xf32>
    %39 = arith.divf %37, %38 : vector<112x32xf32>
    %40 = arith.mulf %34, %39 : vector<112x32xf32>
    %c0_35 = arith.constant 0 : index
    %c0_36 = arith.constant 0 : index
    %c0_37 = arith.constant 0 : index
    %c0_38 = arith.constant 0 : index
    %41 = vector.load %arg14[%c0_35, %c0_36, %c0_37, %c0_38] : memref<1x1x32x32xf32, #tpu.memory_space<vmem>>, vector<1x1x32x32xf32>
    %42 = vector.shape_cast %41 : vector<1x1x32x32xf32> to vector<32x32xf32>
    %cst_39 = arith.constant dense<0.000000e+00> : vector<112x32xf32>
    %43 = tpu.matmul %40, %42, %cst_39 {dimension_numbers = #tpu.dot_dimension_numbers<[1], [0], [0], [1], [0, 0, 1, 1], [], []>} : vector<112x32xf32>, vector<32x32xf32>, vector<112x32xf32> -> vector<112x32xf32>
    %c0_40 = arith.constant 0 : index
    %c0_41 = arith.constant 0 : index
    %c0_42 = arith.constant 0 : index
    %c0_43 = arith.constant 0 : index
    %44 = vector.load %arg15[%c0_40, %c0_41, %c0_42, %c0_43] : memref<1x1x1x32xf32, #tpu.memory_space<vmem>>, vector<1x1x1x32xf32>
    %45 = vector.shape_cast %44 : vector<1x1x1x32xf32> to vector<1x32xf32>
    %46 = vector.broadcast %45 : vector<1x32xf32> to vector<112x32xf32>
    %47 = arith.addf %43, %46 : vector<112x32xf32>
    %48 = arith.negf %47 : vector<112x32xf32>
    %49 = math.exp %48 : vector<112x32xf32>
    %cst_44 = arith.constant 1.000000e+00 : f32
    %50 = vector.broadcast %cst_44 : f32 to vector<112x32xf32>
    %51 = arith.addf %50, %49 : vector<112x32xf32>
    %52 = arith.divf %50, %51 : vector<112x32xf32>
    %53 = arith.mulf %47, %52 : vector<112x32xf32>
    %c0_45 = arith.constant 0 : index
    %c0_46 = arith.constant 0 : index
    %c0_47 = arith.constant 0 : index
    %54 = vector.load %arg6[%c0_45, %c0_46, %c0_47] : memref<1x112x1xf32, #tpu.memory_space<vmem>>, vector<1x112x1xf32>
    %55 = vector.shape_cast %54 : vector<1x112x1xf32> to vector<112x1xf32>
    %56 = vector.broadcast %55 : vector<112x1xf32> to vector<112x32xf32>
    %57 = arith.mulf %53, %56 : vector<112x32xf32>
    %58 = vector.extract_strided_slice %6 {offsets = [0, 0], sizes = [112, 16], strides = [1, 1]} : vector<224x16xbf16> to vector<112x16xbf16>
    %59 = arith.truncf %57 : vector<112x32xf32> to vector<112x32xbf16>
    %cst_48 = arith.constant dense<0.000000e+00> : vector<16x32xf32>
    %60 = tpu.matmul %58, %59, %cst_48 {dimension_numbers = #tpu.dot_dimension_numbers<[0], [0], [1], [1], [0, 1, 1, 1], [], []>} : vector<112x16xbf16>, vector<112x32xbf16>, vector<16x32xf32> -> vector<16x32xf32>
    %c0_49 = arith.constant 0 : index
    %c0_50 = arith.constant 0 : index
    %c0_51 = arith.constant 0 : index
    %c0_52 = arith.constant 0 : index
    %61 = vector.load %arg16[%c0_49, %c0_50, %c0_51, %c0_52] : memref<1x1x32x32xf32, #tpu.memory_space<vmem>>, vector<1x1x32x32xf32>
    %62 = vector.shape_cast %61 : vector<1x1x32x32xf32> to vector<32x32xf32>
    %cst_53 = arith.constant dense<0.000000e+00> : vector<16x32xf32>
    %63 = tpu.matmul %4, %62, %cst_53 {dimension_numbers = #tpu.dot_dimension_numbers<[1], [0], [0], [1], [0, 0, 1, 1], [], []>} : vector<16x32xf32>, vector<32x32xf32>, vector<16x32xf32> -> vector<16x32xf32>
    %c0_54 = arith.constant 0 : index
    %c0_55 = arith.constant 0 : index
    %c0_56 = arith.constant 0 : index
    %c0_57 = arith.constant 0 : index
    %64 = vector.load %arg17[%c0_54, %c0_55, %c0_56, %c0_57] : memref<1x1x32x32xf32, #tpu.memory_space<vmem>>, vector<1x1x32x32xf32>
    %65 = vector.shape_cast %64 : vector<1x1x32x32xf32> to vector<32x32xf32>
    %cst_58 = arith.constant dense<0.000000e+00> : vector<16x32xf32>
    %66 = tpu.matmul %60, %65, %cst_58 {dimension_numbers = #tpu.dot_dimension_numbers<[1], [0], [0], [1], [0, 0, 1, 1], [], []>} : vector<16x32xf32>, vector<32x32xf32>, vector<16x32xf32> -> vector<16x32xf32>
    %67 = arith.addf %63, %66 : vector<16x32xf32>
    %c0_59 = arith.constant 0 : index
    %c0_60 = arith.constant 0 : index
    %c0_61 = arith.constant 0 : index
    %68 = vector.load %arg2[%c0_59, %c0_60, %c0_61] : memref<1x16x4xf32, #tpu.memory_space<vmem>>, vector<1x16x4xf32>
    %69 = vector.shape_cast %68 : vector<1x16x4xf32> to vector<16x4xf32>
    %c0_62 = arith.constant 0 : index
    %c0_63 = arith.constant 0 : index
    %c0_64 = arith.constant 0 : index
    %c0_65 = arith.constant 0 : index
    %70 = vector.load %arg18[%c0_62, %c0_63, %c0_64, %c0_65] : memref<1x1x4x32xf32, #tpu.memory_space<vmem>>, vector<1x1x4x32xf32>
    %71 = vector.shape_cast %70 : vector<1x1x4x32xf32> to vector<4x32xf32>
    %cst_66 = arith.constant dense<0.000000e+00> : vector<16x32xf32>
    %72 = tpu.matmul %69, %71, %cst_66 {dimension_numbers = #tpu.dot_dimension_numbers<[1], [0], [0], [1], [0, 0, 1, 1], [], []>} : vector<16x4xf32>, vector<4x32xf32>, vector<16x32xf32> -> vector<16x32xf32>
    %73 = arith.addf %67, %72 : vector<16x32xf32>
    %c0_67 = arith.constant 0 : index
    %c0_68 = arith.constant 0 : index
    %c0_69 = arith.constant 0 : index
    %c0_70 = arith.constant 0 : index
    %74 = vector.load %arg19[%c0_67, %c0_68, %c0_69, %c0_70] : memref<1x1x1x32xf32, #tpu.memory_space<vmem>>, vector<1x1x1x32xf32>
    %75 = vector.shape_cast %74 : vector<1x1x1x32xf32> to vector<1x32xf32>
    %76 = vector.broadcast %75 : vector<1x32xf32> to vector<16x32xf32>
    %77 = arith.addf %73, %76 : vector<16x32xf32>
    %78 = arith.negf %77 : vector<16x32xf32>
    %79 = math.exp %78 : vector<16x32xf32>
    %cst_71 = arith.constant 1.000000e+00 : f32
    %80 = vector.broadcast %cst_71 : f32 to vector<16x32xf32>
    %81 = arith.addf %80, %79 : vector<16x32xf32>
    %82 = arith.divf %80, %81 : vector<16x32xf32>
    %83 = arith.mulf %77, %82 : vector<16x32xf32>
    %c0_72 = arith.constant 0 : index
    %c0_73 = arith.constant 0 : index
    %c0_74 = arith.constant 0 : index
    %c0_75 = arith.constant 0 : index
    %84 = vector.load %arg20[%c0_72, %c0_73, %c0_74, %c0_75] : memref<1x1x32x32xf32, #tpu.memory_space<vmem>>, vector<1x1x32x32xf32>
    %85 = vector.shape_cast %84 : vector<1x1x32x32xf32> to vector<32x32xf32>
    %cst_76 = arith.constant dense<0.000000e+00> : vector<16x32xf32>
    %86 = tpu.matmul %83, %85, %cst_76 {dimension_numbers = #tpu.dot_dimension_numbers<[1], [0], [0], [1], [0, 0, 1, 1], [], []>} : vector<16x32xf32>, vector<32x32xf32>, vector<16x32xf32> -> vector<16x32xf32>
    %c0_77 = arith.constant 0 : index
    %c0_78 = arith.constant 0 : index
    %c0_79 = arith.constant 0 : index
    %c0_80 = arith.constant 0 : index
    %87 = vector.load %arg21[%c0_77, %c0_78, %c0_79, %c0_80] : memref<1x1x1x32xf32, #tpu.memory_space<vmem>>, vector<1x1x1x32xf32>
    %88 = vector.shape_cast %87 : vector<1x1x1x32xf32> to vector<1x32xf32>
    %89 = vector.broadcast %88 : vector<1x32xf32> to vector<16x32xf32>
    %90 = arith.addf %86, %89 : vector<16x32xf32>
    %91 = arith.addf %4, %90 : vector<16x32xf32>
    %c0_81 = arith.constant 0 : index
    %c0_82 = arith.constant 0 : index
    %c0_83 = arith.constant 0 : index
    %92 = vector.load %arg22[%c0_81, %c0_82, %c0_83] : memref<1x16x32xf32, #tpu.memory_space<vmem>>, vector<1x16x32xf32>
    %93 = vector.shape_cast %92 : vector<1x16x32xf32> to vector<16x32xf32>
    %94 = vector.shape_cast %91 : vector<16x32xf32> to vector<1x16x32xf32>
    tpu.vector_store %arg22[%c0_81, %c0_82, %c0_83], %94 {strides = array<i32>} : memref<1x16x32xf32, #tpu.memory_space<vmem>>, vector<1x16x32xf32>,
    return
  }
  func.func @transform_0(%arg0: i32, %arg1: i32) -> (i32, i32, i32) {
    %c0_i32 = arith.constant 0 : i32
    %c0_i32_0 = arith.constant 0 : i32
    %c0_i32_1 = arith.constant 0 : i32
    return %arg0, %c0_i32, %c0_i32_0 : i32, i32, i32
  }
  func.func @transform_1(%arg0: i32, %arg1: i32) -> (i32, i32, i32) {
    %c0_i32 = arith.constant 0 : i32
    %c0_i32_0 = arith.constant 0 : i32
    %c0_i32_1 = arith.constant 0 : i32
    return %arg0, %c0_i32, %c0_i32_0 : i32, i32, i32
  }
  func.func @transform_2(%arg0: i32, %arg1: i32) -> (i32, i32, i32) {
    %c0_i32 = arith.constant 0 : i32
    %c0_i32_0 = arith.constant 0 : i32
    %c0_i32_1 = arith.constant 0 : i32
    return %arg0, %c0_i32, %c0_i32_0 : i32, i32, i32
  }
  func.func @transform_3(%arg0: i32, %arg1: i32) -> (i32, i32) {
    %c0_i32 = arith.constant 0 : i32
    %c0_i32_0 = arith.constant 0 : i32
    %c0_i32_1 = arith.constant 0 : i32
    return %c0_i32, %c0_i32_0 : i32, i32
  }
  func.func @transform_4(%arg0: i32, %arg1: i32) -> (i32, i32, i32) {
    %c0_i32 = arith.constant 0 : i32
    %c0_i32_0 = arith.constant 0 : i32
    %c0_i32_1 = arith.constant 0 : i32
    return %arg0, %c0_i32, %c0_i32_0 : i32, i32, i32
  }
  func.func @transform_5(%arg0: i32, %arg1: i32) -> (i32, i32, i32) {
    %c0_i32 = arith.constant 0 : i32
    %c0_i32_0 = arith.constant 0 : i32
    %c0_i32_1 = arith.constant 0 : i32
    return %arg0, %c0_i32, %c0_i32_0 : i32, i32, i32
  }
  func.func @transform_6(%arg0: i32, %arg1: i32) -> (i32, i32, i32) {
    %c0_i32 = arith.constant 0 : i32
    %c0_i32_0 = arith.constant 0 : i32
    %c0_i32_1 = arith.constant 0 : i32
    return %arg0, %c0_i32, %c0_i32_0 : i32, i32, i32
  }
  func.func @transform_7(%arg0: i32, %arg1: i32) -> (i32, i32, i32, i32) {
    %c0_i32 = arith.constant 0 : i32
    %c0_i32_0 = arith.constant 0 : i32
    %c0_i32_1 = arith.constant 0 : i32
    return %arg0, %arg1, %c0_i32, %c0_i32_0 : i32, i32, i32, i32
  }
  func.func @transform_8(%arg0: i32, %arg1: i32) -> (i32, i32, i32, i32) {
    %c0_i32 = arith.constant 0 : i32
    %c0_i32_0 = arith.constant 0 : i32
    %c0_i32_1 = arith.constant 0 : i32
    return %arg0, %arg1, %c0_i32, %c0_i32_0 : i32, i32, i32, i32
  }
  func.func @transform_9(%arg0: i32, %arg1: i32) -> (i32, i32, i32, i32) {
    %c0_i32 = arith.constant 0 : i32
    %c0_i32_0 = arith.constant 0 : i32
    %c0_i32_1 = arith.constant 0 : i32
    return %arg0, %arg1, %c0_i32, %c0_i32_0 : i32, i32, i32, i32
  }
  func.func @transform_10(%arg0: i32, %arg1: i32) -> (i32, i32, i32, i32) {
    %c0_i32 = arith.constant 0 : i32
    %c0_i32_0 = arith.constant 0 : i32
    %c0_i32_1 = arith.constant 0 : i32
    return %arg0, %arg1, %c0_i32, %c0_i32_0 : i32, i32, i32, i32
  }
  func.func @transform_11(%arg0: i32, %arg1: i32) -> (i32, i32, i32, i32) {
    %c0_i32 = arith.constant 0 : i32
    %c0_i32_0 = arith.constant 0 : i32
    %c0_i32_1 = arith.constant 0 : i32
    return %arg0, %arg1, %c0_i32, %c0_i32_0 : i32, i32, i32, i32
  }
  func.func @transform_12(%arg0: i32, %arg1: i32) -> (i32, i32, i32, i32) {
    %c0_i32 = arith.constant 0 : i32
    %c0_i32_0 = arith.constant 0 : i32
    %c0_i32_1 = arith.constant 0 : i32
    return %arg0, %arg1, %c0_i32, %c0_i32_0 : i32, i32, i32, i32
  }
  func.func @transform_13(%arg0: i32, %arg1: i32) -> (i32, i32, i32, i32) {
    %c0_i32 = arith.constant 0 : i32
    %c0_i32_0 = arith.constant 0 : i32
    %c0_i32_1 = arith.constant 0 : i32
    return %arg0, %arg1, %c0_i32, %c0_i32_0 : i32, i32, i32, i32
  }
  func.func @transform_14(%arg0: i32, %arg1: i32) -> (i32, i32, i32, i32) {
    %c0_i32 = arith.constant 0 : i32
    %c0_i32_0 = arith.constant 0 : i32
    %c0_i32_1 = arith.constant 0 : i32
    return %arg0, %arg1, %c0_i32, %c0_i32_0 : i32, i32, i32, i32
  }
  func.func @transform_15(%arg0: i32, %arg1: i32) -> (i32, i32, i32, i32) {
    %c0_i32 = arith.constant 0 : i32
    %c0_i32_0 = arith.constant 0 : i32
    %c0_i32_1 = arith.constant 0 : i32
    return %arg0, %arg1, %c0_i32, %c0_i32_0 : i32, i32, i32, i32
  }
  func.func @transform_16(%arg0: i32, %arg1: i32) -> (i32, i32, i32, i32) {
    %c0_i32 = arith.constant 0 : i32
    %c0_i32_0 = arith.constant 0 : i32
    %c0_i32_1 = arith.constant 0 : i32
    return %arg0, %arg1, %c0_i32, %c0_i32_0 : i32, i32, i32, i32
  }
  func.func @transform_17(%arg0: i32, %arg1: i32) -> (i32, i32, i32, i32) {
    %c0_i32 = arith.constant 0 : i32
    %c0_i32_0 = arith.constant 0 : i32
    %c0_i32_1 = arith.constant 0 : i32
    return %arg0, %arg1, %c0_i32, %c0_i32_0 : i32, i32, i32, i32
  }
  func.func @transform_18(%arg0: i32, %arg1: i32) -> (i32, i32, i32, i32) {
    %c0_i32 = arith.constant 0 : i32
    %c0_i32_0 = arith.constant 0 : i32
    %c0_i32_1 = arith.constant 0 : i32
    return %arg0, %arg1, %c0_i32, %c0_i32_0 : i32, i32, i32, i32
  }
  func.func @transform_19(%arg0: i32, %arg1: i32) -> (i32, i32, i32, i32) {
    %c0_i32 = arith.constant 0 : i32
    %c0_i32_0 = arith.constant 0 : i32
    %c0_i32_1 = arith.constant 0 : i32
    return %arg0, %arg1, %c0_i32, %c0_i32_0 : i32, i32, i32, i32
  }
  func.func @transform_20(%arg0: i32, %arg1: i32) -> (i32, i32, i32) {
    %c0_i32 = arith.constant 0 : i32
    %c0_i32_0 = arith.constant 0 : i32
    %c0_i32_1 = arith.constant 0 : i32
    return %arg0, %c0_i32, %c0_i32_0 : i32, i32, i32
  }
}

</mosaic_0001>

<bundles_post_ra>
// kernel: tpu_custom_call.1
= control target key start
LH: loop header
LB: loop body
LE: loop exit
PB: predicated region body
PF: predicated region fallthrough
CT: control target
= control target key end

     0   :  { %s5678_s0 = inlined_call_operand.vmem [shape: f32[2,16,4], index: 0, kind: input, shape index: {}]   ;;  %s5679_s1 = inlined_call_operand.vmem [shape: f32[2,112,1], index: 1, kind: input, shape index: {}]   ;;  %s5680_s2 = inlined_call_operand.vmem [shape: bf16[2,224,16], index: 2, kind: input, shape index: {}]   ;;  %s5681_s3 = inlined_call_operand.vmem [shape: f32[112,2], index: 3, kind: input, shape index: {}]   ;;  %s5682_s4 = inlined_call_operand.vmem [shape: f32[2,112,1], index: 4, kind: input, shape index: {}]   ;;  %s5683_s5 = inlined_call_operand.vmem [shape: f32[2,4,32], index: 5, kind: input, shape index: {}]   ;;  %s5684_s6 = inlined_call_operand.hbm [shape: f32[2,1,32], index: 6, kind: input, shape index: {}]   ;;  %s5685_s7 = inlined_call_operand.vmem [shape: f32[2,4,32,32], index: 7, kind: input, shape index: {}]   ;;  %s5686_s8 = inlined_call_operand.vmem [shape: f32[2,4,32,32], index: 8, kind: input, shape index: {}]   ;;  %s5687_s9 = inlined_call_operand.vmem [shape: f32[2,4,1,32], index: 9, kind: input, shape index: {}]   ;;  %s5688_s10 = inlined_call_operand.vmem [shape: f32[2,4,2,32], index: 10, kind: input, shape index: {}]   ;;  %s5689_s11 = inlined_call_operand.vmem [shape: f32[2,4,1,32], index: 11, kind: input, shape index: {}]   ;;  %s5690_s12 = inlined_call_operand.vmem [shape: f32[2,4,32,32], index: 12, kind: input, shape index: {}]   ;;  %s5691_s13 = inlined_call_operand.vmem [shape: f32[2,4,1,32], index: 13, kind: input, shape index: {}]   ;;  %s5692_s14 = inlined_call_operand.hbm [shape: f32[2,4,32,32], index: 14, kind: input, shape index: {}]   ;;  %s5693_s15 = inlined_call_operand.hbm [shape: f32[2,4,32,32], index: 15, kind: input, shape index: {}]   ;;  %s5694_s16 = inlined_call_operand.vmem [shape: f32[2,4,4,32], index: 16, kind: input, shape index: {}]   ;;  %s5695_s17 = inlined_call_operand.vmem [shape: f32[2,4,1,32], index: 17, kind: input, shape index: {}]   ;;  %s5696_s18 = inlined_call_operand.hbm [shape: f32[2,4,32,32], index: 18, kind: input, shape index: {}]   ;;  %s5697_s19 = inlined_call_operand.hbm [shape: f32[2,4,1,32], index: 19, kind: input, shape index: {}]   ;;  %s5698_s20 = inlined_call_operand.hbm [shape: f32[2,16,32], index: 20, kind: output, shape index: {}]  }
   0x1   :  { %5734 = sst [smem:[#allocation40_spill]] %s5678_s0 }
   0x2   :  { %5735 = sst [smem:[#allocation41_spill]] %s5679_s1 }
   0x3   :  { %5736 = sst [smem:[#allocation42_spill]] %s5680_s2 }
   0x4   :  { %5737 = sst [smem:[#allocation43_spill]] %s5681_s3 }
   0x5   :  { %5738 = sst [smem:[#allocation44_spill]] %s5682_s4 }
   0x6   :  { %5739 = sst [smem:[#allocation45_spill]] %s5683_s5 }
   0x7   :  { %5740 = sst [smem:[#allocation46_spill]] %s5684_s6 }
   0x8   :  { %5741 = sst [smem:[#allocation47_spill]] %s5685_s7 }
   0x9   :  { %5742 = sst [smem:[#allocation48_spill]] %s5686_s8 }
   0xa   :  { %5743 = sst [smem:[#allocation49_spill]] %s5687_s9 }
   0xb   :  { %5744 = sst [smem:[#allocation50_spill]] %s5688_s10 }
   0xc   :  { %5745 = sst [smem:[#allocation51_spill]] %s5689_s11 }
   0xd   :  { %5746 = sst [smem:[#allocation52_spill]] %s5690_s12 }
   0xe   :  { %5747 = sst [smem:[#allocation53_spill]] %s5691_s13 }
   0xf   :  { %5748 = sst [smem:[#allocation54_spill]] %s5692_s14 }
  0x10   :  { %5749 = sst [smem:[#allocation55_spill]] %s5693_s15 }
  0x11   :  { %5750 = sst [smem:[#allocation56_spill]] %s5694_s16 }
  0x12   :  { %5751 = sst [smem:[#allocation57_spill]] %s5695_s17 }
  0x13   :  { %5752 = sst [smem:[#allocation58_spill]] %s5696_s18 }
  0x14   :  { %5753 = sst [smem:[#allocation59_spill]] %s5697_s19 }
  0x15   :  { %5754 = sst [smem:[#allocation60_spill]] %s5698_s20 }
  0x16   :  { %25 = vsyncpa [#allocation3], 0 }
  0x17   :  { %27 = vsyncpa [#allocation3 + $0x1], 0 }
  0x18   :  { %28 = vsyncpa [#allocation6], 0 }
  0x19   :  { %30 = vsyncpa [#allocation6 + $0x1], 0 }
  0x1a   :  { %31 = vsyncpa [#allocation9], 0 }
  0x1b   :  { %33 = vsyncpa [#allocation9 + $0x1], 0 }
  0x1c   :  { %34 = vsyncpa [#allocation4], 0 }
  0x1d   :  { %36 = vsyncpa [#allocation4 + $0x1], 0  ;;  %s4805_s1 = smov 0   ;;  %s4807_s22 = smov 0  }
  0x1e   :  { %s4809_s23 = smov 0   ;;  %s4811_s24 = smov 0  }
  0x1f   :  { %s4813_s2 = smov 0   ;;  %s4815_s25 = smov 0  }
  0x20   :  { %s4817_s3 = smov 0   ;;  %s4819_s26 = smov 0  }
  0x21   :  { %s4821_s27 = smov 0   ;;  %s4823_s28 = smov 0  }
  0x22   :  { %s4825_s4 = smov 0  }
  0x23 LB: > { %5755 = sst [smem:[#allocation16_spill]] %s4649_s22  ;;  %s51_s29 = sadd.s32 1, %s4677_s27  ;;  %s4685_s4 = sphi %s4825_s4, %s42_s4   ;;  %s4681_s28 = sphi %s4823_s28, %s5855_s28   ;;  %s4677_s27 = sphi %s4821_s27, %s5854_s27   ;;  %s4673_s26 = sphi %s4819_s26, %s5853_s26   ;;  %s4669_s3 = sphi %s4817_s3, %s5852_s3   ;;  %s4665_s25 = sphi %s4815_s25, %s5851_s25   ;;  %s4661_s2 = sphi %s4813_s2, %s5850_s2   ;;  %s4657_s24 = sphi %s4811_s24, %s5849_s24   ;;  %s4653_s23 = sphi %s4809_s23, %s5848_s23   ;;  %s4649_s22 = sphi %s4807_s22, %s5847_s22   ;;  %s4645_s1 = sphi %s4805_s1, %s5846_s1  }
  0x24   : > { %5756 = sst [smem:[#allocation17_spill]] %s4653_s23  ;;  %p220_p0 = scmp.eq.s32.totalorder %s4685_s4, 0 }
  0x25   : > { %5757 = sst [smem:[#allocation18_spill]] %s4657_s24  ;;  %p4862_p1 = scmp.ge.s32.totalorder %s51_s29, 4 }
  0x26   : > { %5758 = sst [smem:[#allocation19_spill]] %s4661_s2  ;;  %p443_p2 = scmp.ne.s32.totalorder %s4653_s23, %s4649_s22 }
  0x27   : > { %5759 = sst [smem:[#allocation20_spill]] %s4665_s25  ;;  %s5857_s29 = smov (%p4862_p1, %s51_s29), 0 }
  0x28   : > { %5760 = sst [smem:[#allocation21_spill]] %s4669_s3  ;;  %p4875_p3 = por %p443_p2, %p220_p0 }
  0x29   : > { %5761 = sst [smem:[#allocation22_spill]] %s4673_s26  ;;  %p5711_p4 = scmp.lt.s32.totalorder %s4685_s4, 8 }
  0x2a   : > { %5762 = sst [smem:[#allocation23_spill]] %s4677_s27  ;;  %s5702_s20 = sshll.u32 %s4681_s28, 4 }
  0x2b   : > { %5763 = sst [smem:[#allocation24_spill]] %s4681_s28  ;;  %s5701_s17 = sand.u32 1, %s4653_s23  }
  0x2c   : > { %5764 = sst [smem:[#allocation25_spill]] %s4685_s4  ;;  %s4885_s0 = sshll.u32 %s5701_s17, 5 }
  0x2d   : > { %5766 = sst [smem:[#allocation26_spill]] %s5857_s29  ;;  %s3649_s13 = sshll.u32 %s4677_s27, 2 }
  0x2e   : > { %s785_s12 = sadd.s32 %s3649_s13, %s5702_s20  ;;  %s779_s10 = scalar_lea.vmem [#allocation5], %s4885_s0 }
  0x2f   : > { %s4890_s11 = sshll.u32 %s785_s12, 7  ;;  %s788_s8 = sshll.u32 %s779_s10, 4  ;;  %s789_s8 = int_to_ptr.vmem [resolvable:$true] %s788_s8 }
  0x30   : > { %s5768_s14 = sld [smem:[#allocation54_spill]]  ;;  %p4901_p5 = pnand %p5711_p4, %p4875_p3 }
  0x31   : > { %p3662_p6 = scmp.ge.s32.totalorder %s4685_s4, 1  ;;  %p882_p7 = scmp.lt.s32.totalorder %s4685_s4, 9 }
  0x32   : > { %s5770_s12 = sand.u32 1, %s4685_s4   ;;  %p5707_p8 = pneg %p4901_p5 }
  0x33   : > { %s4909_s13 = scalar_lea.sflag [#allocation6], %s5770_s12  ;;  %s4430_s10 = scalar_lea.vmem %s789_s8, 512 }
  0x34   : > { %p4431_p9 = scmp.ne.s32.totalorder %s789_s8, %s4430_s10  ;;  %s4687_s7 = smov [#allocation5]  }
  0x35   : > { %s4435_s9 = sshll.u32 %s4687_s7, 4  ;;  %s4436_s9 = int_to_ptr.vmem [resolvable:$false] %s4435_s9 }
  0x36   : > { %s787_s5 = scalar_lea.hbm %s5768_s14, %s4890_s11  ;;  %p4433_p10 = pnand %p4431_p9, %p5707_p8 }
  0x37   : > { %s4437_s21 = scalar_lea.vmem %s4436_s9, 1024  ;;  %p4438_p12 = scmp.lt.s32.totalorder %s789_s8, %s4436_s9 }
  0x38   : > { %p4434_p11 = pneg %p4433_p10  ;;  %p4439_p13 = scmp.lt.s32.totalorder %s4437_s21, %s4430_s10 }
  0x3a   : > { %p4440_p2 = por %p4439_p13, %p4438_p12 }
  0x3c   : > { %p4441_p3 = pnand %p4440_p2, %p4434_p11 }
  0x3e   : > { %4444 = shalt.err (!%p4441_p3)
}
  0x3f   : > { %s5705_s17 = smov 128   ;;  %s5708_s12 = smov 8  }
  0x40   : > { %4168 = dma.hbm_to_vmem [thread:$0]  (!%p4901_p5), %s787_s5, 512, %s789_s8, %s4909_s13, %s5705_s17, %s5705_s17, %s5708_s12  }
  0x41   : > { %p4926_p9 = pnand %p3662_p6, %p882_p7  ;;  %s5773_s18 = sld [smem:[#allocation58_spill]] }
  0x42   : > { %s846_s20 = scalar_lea.vmem [#allocation8], %s4885_s0  ;;  %s5774_s3 = sand.u32 1, %s4685_s4  }
  0x43   : > { %s5771_s10 = scalar_select %p4926_p9, 1, 0 }
  0x44   : > { %s855_s14 = sshll.u32 %s846_s20, 4  ;;  %s4937_s26 = scalar_lea.sflag [#allocation9], %s5774_s3  ;;  %s856_s14 = int_to_ptr.vmem [resolvable:$true] %s855_s14 }
  0x45   : > { %5772 = sst [smem:[#allocation27_spill]] %s5771_s10  ;;  %s4458_s19 = scalar_lea.vmem %s856_s14, 512 }
  0x46   : > { %p4459_p10 = scmp.ne.s32.totalorder %s856_s14, %s4458_s19  ;;  %s4690_s5 = smov [#allocation8]  }
  0x47   : > { %s854_s21 = scalar_lea.hbm %s5773_s18, %s4890_s11  ;;  %s4463_s8 = sshll.u32 %s4690_s5, 4  ;;  %s4464_s8 = int_to_ptr.vmem [resolvable:$false] %s4463_s8 }
  0x48   : > { %p4461_p11 = pnand %p4459_p10, %p5707_p8  ;;  %s4465_s17 = scalar_lea.vmem %s4464_s8, 1024 }
  0x49   : > { %p4466_p6 = scmp.lt.s32.totalorder %s856_s14, %s4464_s8  ;;  %p4467_p7 = scmp.lt.s32.totalorder %s4465_s17, %s4458_s19 }
  0x4a   : > { %p4462_p12 = pneg %p4461_p11 }
  0x4b   : > { %p4468_p13 = por %p4467_p7, %p4466_p6 }
  0x4d   : > { %p4469_p2 = pnand %p4468_p13, %p4462_p12 }
  0x4f   : > { %4472 = shalt.err (!%p4469_p2)
}
  0x50   : > { %s5775_s20 = smov 128   ;;  %s4949_s17 = sadd.s32 4294967295, %s4685_s4  }
  0x51   : > { %4174 = dma.hbm_to_vmem [thread:$0]  (!%p4901_p5), %s854_s21, 512, %s856_s14, %s4937_s26, %s5775_s20, %s5775_s20, %s5708_s12  }
  0x52   : > { %s3644_s19 = sadd.s32 4294967294, %s4685_s4   ;;  %s54_s3 = sadd.s32 1, %s4681_s28 }
  0x53   : > { %s212_s7 = sadd.s32 1, %s4665_s25  ;;  %s5859_s3 = smov (!%p4862_p1, %s54_s3), %s4681_s28 }
  0x54   : > { %p219_p3 = scmp.ne.s32.totalorder %s4665_s25, %s4661_s2  ;;  %p225_p10 = scmp.ne.s32.totalorder %s4661_s2, %s4657_s24 }
  0x55   : > { %p56_p11 = scmp.ge.s32.totalorder %s5859_s3, 2  ;;  %p226_p12 = scmp.eq.s32.totalorder %s4949_s17, 0 }
  0x56   : > { %p4967_p6 = por %p220_p0, %p219_p3  ;;  %s432_s9 = ssub.s32 %s4677_s27, %s5857_s29 }
  0x57   : > { %s5861_s3 = smov (%p56_p11, %s5859_s3), 0  ;;  %p4978_p1 = por %p226_p12, %p225_p10 }
  0x58   : > { %5777 = sst [smem:[#allocation28_spill]] %s5861_s3  ;;  %p449_p7 = scmp.ne.s32.totalorder %s4649_s22, %s4645_s1 }
  0x59   : > { %s209_s21 = ssub.s32 %s4681_s28, %s5861_s3  ;;  %p613_p0 = scmp.eq.s32.totalorder %s4949_s17, 7 }
  0x5a   : > { %p210_p13 = scmp.eq.s32.totalorder %s209_s21, 0  ;;  %s433_s5 = sor.u32 %s432_s9, %s209_s21 }
  0x5b   : > { %p434_p2 = scmp.eq.s32.totalorder %s433_s5, 0  ;;  %p4987_p8 = por %p449_p7, %p226_p12 }
  0x5c   : > { %s4992_s12 = scalar_select %p210_p13, %s4665_s25, %s212_s7  }
  0x5d   : > { %s5781_s18 = sadd.s32 1, %s4653_s23  ;;  %p5002_p11 = por %p613_p0, %p219_p3 }
  0x5e   : > { %5780 = sst [smem:[#allocation29_spill]] %s4992_s12  ;;  %p619_p4 = scmp.eq.s32.totalorder %s3644_s19, 7 }
  0x5f   : > { %s4997_s29 = scalar_select %p434_p2, %s4653_s23, %s5781_s18  }
  0x60   : > { %s5783_s10 = scalar_select %p5002_p11, 1, 0 }
  0x61   : > { %5782 = sst [smem:[#allocation30_spill]] %s4997_s29  ;;  %s681_s1 = sand.u32 1, %s4665_s25  }
  0x62   : > { %5784 = sst [smem:[#allocation31_spill]] %s5783_s10  ;;  %s5785_s3 = sshll.u32 %s4681_s28, 4 }
  0x63   : > { %s5786_s6 = sld [smem:[#allocation46_spill]]  ;;  %p5015_p12 = por %p619_p4, %p225_p10 }
  0x64   : > { %p5789_p7 = scmp.lt.s32.totalorder %s4685_s4, 8  ;;  %s684_s7 = scalar_lea.vmem [#allocation2], %s681_s1 }
  0x65   : > { %s5787_s5 = scalar_select %p5015_p12, 1, 0 }
  0x66   : > { %p5023_p13 = pnand %p5789_p7, %p4967_p6  ;;  %s691_s19 = sshll.u32 %s684_s7, 4  ;;  %s692_s19 = int_to_ptr.vmem [resolvable:$true] %s691_s19 }
  0x67   : > { %5788 = sst [smem:[#allocation32_spill]] %s5787_s5  ;;  %s682_s12 = scalar_lea.sflag [#allocation3], %s681_s1 }
  0x68   : > { %p4475_p3 = pneg %p5023_p13  ;;  %s4486_s22 = scalar_lea.vmem %s692_s19, 16 }
  0x69   : > { %s689_s21 = scalar_lea.hbm %s5786_s6, %s5785_s3  ;;  %p4487_p0 = scmp.ne.s32.totalorder %s692_s19, %s4486_s22 }
  0x6a   : > { %s4691_s3 = smov [#allocation2]  }
  0x6b   : > { %p4489_p2 = pnand %p4487_p0, %p4475_p3  ;;  %s4491_s9 = sshll.u32 %s4691_s3, 4  ;;  %s4492_s9 = int_to_ptr.vmem [resolvable:$false] %s4491_s9 }
  0x6c   : > { %s4493_s14 = scalar_lea.vmem %s4492_s9, 32  ;;  %p4494_p10 = scmp.lt.s32.totalorder %s692_s19, %s4492_s9 }
  0x6d   : > { %p4490_p4 = pneg %p4489_p2  ;;  %p4495_p6 = scmp.lt.s32.totalorder %s4493_s14, %s4486_s22 }
  0x6f   : > { %p4496_p7 = por %p4495_p6, %p4494_p10 }
  0x71   : > { %p4497_p12 = pnand %p4496_p7, %p4490_p4 }
  0x73   : > { %4500 = shalt.err (!%p4497_p12)
}
  0x74   : > { %4165 = dma.hbm_to_vmem [thread:$0]  (!%p5023_p13), %s689_s21, 16, %s692_s19, %s682_s12  }
  0x75   : > { %s5791_s15 = sld [smem:[#allocation55_spill]]  ;;  %s802_s25 = scalar_lea.vmem [#allocation7], %s4885_s0 }
  0x76   : > { %s811_s29 = sshll.u32 %s802_s25, 4  ;;  %p5792_p0 = pneg %p4901_p5  ;;  %s812_s29 = int_to_ptr.vmem [resolvable:$true] %s811_s29 }
  0x77   : > { %s4514_s3 = scalar_lea.vmem %s812_s29, 512  ;;  %s4692_s22 = smov [#allocation7]  }
  0x78   : > { %p4515_p3 = scmp.ne.s32.totalorder %s812_s29, %s4514_s3  ;;  %s4519_s9 = sshll.u32 %s4692_s22, 4  ;;  %s4520_s9 = int_to_ptr.vmem [resolvable:$false] %s4519_s9 }
  0x79   : > { %s4521_s18 = scalar_lea.vmem %s4520_s9, 1024  ;;  %p4522_p12 = scmp.lt.s32.totalorder %s812_s29, %s4520_s9 }
  0x7a   : > { %p4517_p2 = pnand %p4515_p3, %p5792_p0  ;;  %p4523_p10 = scmp.lt.s32.totalorder %s4521_s18, %s4514_s3 }
  0x7b   : > { %s810_s6 = scalar_lea.hbm %s5791_s15, %s4890_s11 }
  0x7c   : > { %p4518_p4 = pneg %p4517_p2  ;;  %p4524_p13 = por %p4523_p10, %p4522_p12 }
  0x7e   : > { %p4525_p6 = pnand %p4524_p13, %p4518_p4 }
  0x80   : > { %4528 = shalt.err (!%p4525_p6)
}
  0x81   : > { %s5793_s11 = smov 8   ;;  %s3660_s25 = sshll.u32 %s4681_s28, 2 }
  0x82   : > { %4171 = dma.hbm_to_vmem [thread:$0]  (!%p4901_p5), %s810_s6, 512, %s812_s29, %s4909_s13, %s5775_s20, %s5775_s20, %s5793_s11  }
  0x83   : > { %s5794_s0 = sand.u32 1, %s4653_s23   ;;  %s873_s19 = sadd.s32 %s4677_s27, %s3660_s25 }
  0x84   : > { %s868_s12 = scalar_lea.vmem [#allocation10], %s5794_s0  ;;  %s3661_s14 = sshll.u32 %s873_s19, 4 }
  0x85   : > { %s877_s21 = sshll.u32 %s868_s12, 4  ;;  %s5795_s3 = sld [smem:[#allocation59_spill]]  ;;  %s878_s21 = int_to_ptr.vmem [resolvable:$true] %s877_s21 }
  0x86   : > { %s4542_s9 = scalar_lea.vmem %s878_s21, 16  ;;  %p5796_p3 = pmov %p5792_p0 }
  0x87   : > { %p4543_p7 = scmp.ne.s32.totalorder %s878_s21, %s4542_s9  ;;  %s4693_s18 = smov [#allocation10]  }
  0x88   : > { %s4547_s15 = sshll.u32 %s4693_s18, 4  ;;  %s4548_s15 = int_to_ptr.vmem [resolvable:$false] %s4547_s15 }
  0x89   : > { %p4545_p0 = pnand %p4543_p7, %p5796_p3  ;;  %s4549_s6 = scalar_lea.vmem %s4548_s15, 32 }
  0x8a   : > { %p4550_p4 = scmp.lt.s32.totalorder %s878_s21, %s4548_s15  ;;  %p4551_p12 = scmp.lt.s32.totalorder %s4549_s6, %s4542_s9 }
  0x8b   : > { %s875_s22 = scalar_lea.hbm %s5795_s3, %s3661_s14  ;;  %p4546_p2 = pneg %p4545_p0 }
  0x8c   : > { %p4552_p10 = por %p4551_p12, %p4550_p4 }
  0x8e   : > { %p4553_p13 = pnand %p4552_p10, %p4546_p2 }
  0x90   : > { %4556 = shalt.err (!%p4553_p13)
}
  0x91   : > { %4177 = dma.hbm_to_vmem [thread:$0]  (!%p4901_p5), %s875_s22, 16, %s878_s21, %s4937_s26  }
  0x92   : > { %886 = sbr.rel (%p4926_p9) target bundleno = 1845 (0x735), region = 100 }
  0x97   : > { %s5061_s13 = sand.u32 1, %s4661_s2  }
  0x98   : > { %s889_s20 = scalar_lea.sflag [#allocation3], %s5061_s13 }
  0x99   : > { %4628 = dma.done.wait (%p4978_p1), %s889_s20, 16  }
  0x9a   : > { %4630 = vsyncadd (%p4978_p1), %s889_s20, 4294967280  ;;  %s5798_s15 = sld [smem:[#allocation16_spill]]  ;;  %s896_s16 = sand.u32 1, %s4949_s17  }
  0x9b   : > { %s897_s0 = scalar_lea.sflag [#allocation6], %s896_s16 }
  0xa0   : > { %s5716_s26 = sand.u32 1, %s5798_s15  }
  0xa1   : > { %s3663_s25 = sshll.u32 %s5716_s26, 5 }
  0xa2   : > { %s5073_s12 = scalar_lea.vmem [#allocation5], %s3663_s25 }
  0xa3   : > { %5799 = sst [smem:[#allocation33_spill]] %s5073_s12 }
  0xa4   : > { %4632 = dma.done.wait (%p4987_p8), %s897_s0, 1024  }
  0xa5   : > { %4634 = vsyncadd (%p4987_p8), %s897_s0, 4294966272  ;;  %s5079_s21 = scalar_lea.vmem [#allocation7], %s3663_s25  ;;  %s915_s30 = scalar_lea.sflag [#allocation9], %s896_s16 }
  0xa6   : > { %5800 = sst [smem:[#allocation34_spill]] %s5079_s21  ;;  %s5081_s19 = scalar_lea.vmem [#allocation8], %s3663_s25 }
  0xa7   : > { %5801 = sst [smem:[#allocation35_spill]] %s5081_s19 }
  0xa8   : > { %4636 = dma.done.wait (%p4987_p8), %s915_s30, 528  }
  0xa9   : > { %4638 = vsyncadd (%p4987_p8), %s915_s30, 4294966768  ;;  %s5802_s17 = sld [smem:[#allocation22_spill]]  ;;  %s3666_s1 = sshll.u32 %s5061_s13, 4 }
  0xaa   : > { %s5803_s14 = sld [smem:[#allocation21_spill]] }
  0xab   : > { %s5804_s6 = sld [smem:[#allocation40_spill]] }
  0xac   : > { %s5805_s25 = sld [smem:[#allocation41_spill]] }
  0xad   : > { %s5807_s26 = sld [smem:[#allocation42_spill]] }
  0xae   : > { %s5808_s23 = sld [smem:[#allocation44_spill]] }
  0xaf   : > { %p1096_p5 = scmp.lt.s32.totalorder %s5802_s17, 1  ;;  %s5810_s18 = sld [smem:[#allocation45_spill]] }
  0xb0   : > { %p1122_p9 = scmp.lt.s32.totalorder %s5803_s14, 3  ;;  %s5814_s9 = sld [smem:[#allocation48_spill]] }
  0xb1   : > { %s5863_s17 = smov (!%p1096_p5, %s5802_s17), 1  ;;  %s5816_s12 = sld [smem:[#allocation50_spill]] }
  0xb2   : > { %s1123_s7 = scalar_select %p1122_p9, %s5803_s14, 3 }
  0xb3   : > { %s3830_s3 = sshll.u32 %s5863_s17, 4  ;;  %s4149_s22 = smul.u32 112, %s5863_s17 }
  0xb4   : > { %s5095_s29 = scalar_lea.vmem %s5804_s6, %s3830_s3  ;;  %s3672_s20 = sshll.u32 %s5863_s17, 2 }
  0xb5   : > { %s5100_s0 = scalar_lea.vmem %s5805_s25, %s4149_s22  ;;  %s5105_s28 = scalar_lea.vmem %s5807_s26, %s4149_s22 }
  0xb6   : > { %5806 = sst [smem:[#allocation36_spill]] %s5100_s0  ;;  %s5110_s5 = scalar_lea.vmem %s5808_s23, %s4149_s22 }
  0xb7   : > { %5809 = sst [smem:[#allocation37_spill]] %s5110_s5  ;;  %s1119_s6 = scalar_lea.vmem %s5810_s18, %s3672_s20 }
  0xb8   : > { %s3673_s17 = sshll.u32 %s1123_s7, 2  ;;  %s5115_s4 = sadd.s32 %s3672_s20, %s1123_s7 }
  0xb9   : > { %s1126_s11 = sadd.s32 %s3830_s3, %s3673_s17  ;;  %s3681_s22 = sshll.u32 %s5115_s4, 1 }
  0xba   : > { %s3675_s27 = sshll.u32 %s1126_s11, 3  ;;  %s5812_s25 = sld [smem:[#allocation47_spill]] }
  0xbb   : > { %s5130_s18 = scalar_lea.vmem %s5814_s9, %s3675_s27  ;;  %s5135_s3 = scalar_lea.vmem %s5816_s12, %s3681_s22 }
  0xbc   : > { %5815 = sst [smem:[#allocation39_spill]] %s5130_s18  ;;  %s3688_s20 = sshll.u32 %s5115_s4, 2 }
  0xbd   : > { %s5817_s8 = sld [smem:[#allocation51_spill]]  ;;  %s5822_s17 = sand.u32 1, %s5798_s15  }
  0xbe   : > { %s5818_s21 = sld [smem:[#allocation52_spill]]  ;;  %s5162_s26 = scalar_lea.vmem [#allocation10], %s5822_s17 }
  0xbf   : > { %s5819_s5 = sld [smem:[#allocation53_spill]]  ;;  %s5164_s23 = scalar_lea.vmem [#allocation11], %s3666_s1 }
  0xc0   : > { %s5125_s30 = scalar_lea.vmem %s5812_s25, %s3675_s27  ;;  %s5821_s22 = sld [smem:[#allocation56_spill]] }
  0xc1   : > { %5813 = sst [smem:[#allocation38_spill]] %s5125_s30  ;;  %p3690_p8 = scmp.ne.s32.totalorder %s5803_s14, 0 }
  0xc2   : > { %s5820_s30 = sld [smem:[#allocation57_spill]] }
  0xc3   : > { %s1159_s11 = scalar_lea.vmem %s5817_s8, %s5115_s4 }
  0xc4   : > { %s5144_s16 = scalar_lea.vmem %s5818_s21, %s3675_s27  ;;  %1195 = sbr.rel (%p3690_p8) target bundleno = 402 (0x192), region = 124 }
  0xc5   : > { %s1175_s7 = scalar_lea.vmem %s5819_s5, %s5115_s4  ;;  %s5823_s5 = scalar_lea.vmem (!%p3690_p8), [#allocation2], %s5061_s13 }
  0xc6   : > { %s5158_s18 = scalar_lea.vmem %s5821_s22, %s3688_s20 }
  0xc8   : > { %s1190_s10 = scalar_lea.vmem %s5820_s30, %s5115_s4 }
  0xc9   : > { %v1198_v0 = vld [vmem:[%s1119_s6] sm:$0xf]  ;;  %vm1213_vm0 = vcmask 1043456   ;;  %vm1206_vm1 = vcmask 31744   ;;  %v1197_v2 = vld [vmem:[%s5095_s29 + $0x8] sm:$0xff]  ;;  %vm1292_vm2 = vcmask 261120  }
  0xca   : > { %v1196_v1 = vld [vmem:[%s5095_s29] sm:$0xff]  ;;  %3948 = vmatprep.subr.msk.mxu0 %vm1213_vm0, %v1198_v0 }
  0xcb   : > { %3950 = vmatprep.mubr.msk.f32.mxu0 %vm1206_vm1, %v1196_v1  ;;  %3949 = vmatpush3.msk.msra.mxu0 %vm1213_vm0, %v1198_v0  ;;  %v3691_v3 = vld [vmem:[%s5823_s5] ss:$0 sm:$0xff] }
  0xcc   : > { %3951 = vmatmul.mubr.msk.f32.vlgmr.msra.gmra.mxu0 %vm1206_vm1, %v1197_v2 }
 0x18c   : > { %v3952_v4 = vpop.f32.mrf.mxu0 }
 0x18d   : > { %v1289_v5 = vadd.f32 %v3952_v4, %v3691_v3 }
 0x18e   : > { %v1283_v6 = vpop.f32.mrf.mxu0 }
 0x18f   : > { %1294 = vst.msk [vmem:[%s5164_s23 + $0x8] sm:$0xff] %vm1292_vm2, %v1289_v5  ;;  %v1284_v7 = vadd.f32 %v3691_v3, %v1283_v6 }
 0x191   : > { %1293 = vst.msk [vmem:[%s5164_s23] sm:$0xff] %vm1292_vm2, %v1284_v7 }
 0x192 PF: > { %vm1396_vm3 = vcmask 130048   ;;  %v5176_v11 = vld [vmem:[%s5105_s28] sm:$0xff]   ;;  %v5181_v12 = vld [vmem:[%s5105_s28 + $0x8] sm:$0xff]   ;;  %v5184_v13 = vld [vmem:[%s5105_s28 + $0x10] sm:$0xff]   ;;  %s5824_s15 = sld [smem:[#allocation39_spill]]  ;;  %vm2124_vm4 = vcmask 1041408  }
 0x193   : > { %3955 = vmatprep.mubr.msk.bf16.mxu0 %vm1396_vm3, %v5176_v11  ;;  %v5191_v14 = vld [vmem:[%s5105_s28 + $0x18] sm:$0xff]   ;;  %v5194_v15 = vld [vmem:[%s5105_s28 + $0x20] sm:$0xff]   ;;  %v5201_v16 = vld [vmem:[%s5105_s28 + $0x28] sm:$0xff]   ;;  %s5825_s21 = sld [smem:[#allocation38_spill]]  ;;  %vm2081_vm5 = vcmask 15360   ;;  %v4694_v40 = vmov 0  }
 0x194   : > { %v5204_v17 = vld [vmem:[%s5105_s28 + $0x30] sm:$0xff]   ;;  %v4288_v18 = vld [vmem:[%s5105_s28 + $0x38] sm:$0xff]   ;;  %v4289_v19 = vld [vmem:[%s5105_s28 + $0x40] sm:$0xff]   ;;  %s5826_s1 = sld [smem:[#allocation43_spill]]  ;;  %4279 = vset.pattern.permute.xlu0 %v4694_v40  ;;  %4280 = vset.pattern.permute.xlu1 %v4694_v40  ;;  %vm1592_vm6 = vcmask 261120   ;;  %vm4696_vm7 = vmmov 0  }
 0x195   : > { %v4290_v20 = vld [vmem:[%s5105_s28 + $0x48] sm:$0xff]   ;;  %v4291_v21 = vld [vmem:[%s5105_s28 + $0x50] sm:$0xff]   ;;  %v4292_v22 = vld [vmem:[%s5105_s28 + $0x58] sm:$0xff]   ;;  %s5828_s6 = sld [smem:[#allocation36_spill]]  ;;  %vm2810_vm8 = vcmask 916480   ;;  %vm3035_vm9 = vcmask 1043456  }
 0x196   : > { %v1296_v9 = vld [vmem:[%s5164_s23 + $0x8] sm:$0xff]  ;;  %s5829_s9 = sld [smem:[#allocation37_spill]]  ;;  %vm3028_vm10 = vcmask 31744   ;;  %s3249_s30 = sshll.u32 %s5164_s23, 4  ;;  %s5611_s30 = int_to_ptr.vmem [resolvable:$true] %s3249_s30 }
 0x197   : > { %v4293_v23 = vld [vmem:[%s5105_s28 + $0x60] sm:$0xff]   ;;  %v4294_v24 = vld [vmem:[%s5105_s28 + $0x68] sm:$0xff]   ;;  %s5836_s14 = sld [smem:[#allocation35_spill]]  ;;  %s4557_s25 = scalar_lea.vmem %s5611_s30, 256 }
 0x198   : > { %v1295_v8 = vld [vmem:[%s5164_s23] sm:$0xff]  ;;  %v2080_v25 = vld [vmem:[%s5135_s3] sm:$0x3]  ;;  %s5838_s27 = sld [smem:[#allocation22_spill]]  ;;  %p4558_p1 = scmp.ne.s32.totalorder %s5611_s30, %s4557_s25 }
 0x199   : > { %v1325_v10 = vpack.c.bf16 %v1296_v9, %v1295_v8  ;;  %v1591_v26 = vld [vmem:[%s5824_s15 + $0x18] sm:$0xff]  ;;  %v1590_v27 = vld [vmem:[%s5824_s15 + $0x10] sm:$0xff]  ;;  %v1589_v28 = vld [vmem:[%s5824_s15 + $0x8] sm:$0xff]  ;;  %s5840_s2 = sld [smem:[#allocation60_spill]] }
 0x19a   : > { %3983 = vmatprep.subr.mxu1 %v1591_v26  ;;  %v1588_v29 = vld [vmem:[%s5824_s15] sm:$0xff]  ;;  %v5230_v30 = vld [vmem:[%s5825_s21 + $0x18] sm:$0xff]  ;;  %s5827_s0 = smov %s5826_s1  ;;  %p4559_p6 = pnand %p4558_p1, %p5002_p11 }
 0x19b   : > { %3953 = vmatprep.subr.bf16.mxu0 %v1325_v10  ;;  %3984 = vmatpush3.msra.mxu1 %v1591_v26  ;;  %v2066_v31 = vld [vmem:[%s5826_s1] sm:$0xff]  ;;  %v2067_v32 = vld [vmem:[%s5827_s0 + $0x8] sm:$0xff]  ;;  %v2068_v33 = vld [vmem:[%s5827_s0 + $0x10] sm:$0xff] }
 0x19c   : > { %3954 = vmatpush3.bf16.msra.mxu0 %v1325_v10  ;;  %3985 = vmatprep.subr.mxu1 %v1590_v27  ;;  %v2069_v34 = vld [vmem:[%s5827_s0 + $0x18] sm:$0xff]  ;;  %v2070_v35 = vld [vmem:[%s5827_s0 + $0x20] sm:$0xff]  ;;  %v2071_v36 = vld [vmem:[%s5827_s0 + $0x28] sm:$0xff]  ;;  %p4560_p7 = pneg %p4559_p6 }
 0x19d   : > { %4041 = vmatprep.subr.msk.mxu0 %vm2124_vm4, %v2080_v25  ;;  %3986 = vmatpush3.msra.mxu1 %v1590_v27  ;;  %v2072_v37 = vld [vmem:[%s5827_s0 + $0x30] sm:$0xff]  ;;  %v2073_v38 = vld [vmem:[%s5827_s0 + $0x38] sm:$0xff]  ;;  %v1947_v39 = vld [vmem:[%s5828_s6] sm:$0xff] }
 0x19e   : > { %3987 = vmatprep.subr.mxu1 %v1589_v28  ;;  %1964 = vperm.xlu0 %4279, %v1947_v39   ;;  %v2074_v41 = vld [vmem:[%s5827_s0 + $0x40] sm:$0xff]  ;;  %v2075_v42 = vld [vmem:[%s5827_s0 + $0x48] sm:$0xff]  ;;  %v1949_v43 = vld [vmem:[%s5828_s6 + $0x10] sm:$0xff] }
 0x19f   : > { %3956 = vmatmul.mubr.msk.bf16.vlgmr.msra.gmra.mxu0 %vm1396_vm3, %v5181_v12  ;;  %3988 = vmatpush3.msra.mxu1 %v1589_v28  ;;  %v1948_v44 = vld [vmem:[%s5828_s6 + $0x8] sm:$0xff]  ;;  %v2076_v45 = vld [vmem:[%s5827_s0 + $0x50] sm:$0xff]  ;;  %v2077_v46 = vld [vmem:[%s5827_s0 + $0x58] sm:$0xff]  ;;  %s5841_s20 = smov %s5840_s2 }
 0x1a0   : > { %3959 = vmatprep.mubr.msk.bf16.mxu0 %vm1396_vm3, %v5184_v13  ;;  %4042 = vmatpush3.msk.msra.mxu0 %vm2124_vm4, %v2080_v25  ;;  %v1950_v47 = vld [vmem:[%s5828_s6 + $0x18] sm:$0xff]  ;;  %v1951_v48 = vld [vmem:[%s5828_s6 + $0x20] sm:$0xff]  ;;  %v2079_v50 = vld [vmem:[%s5827_s0 + $0x68] sm:$0xff] }
 0x1a1   : > { %3989 = vmatprep.subr.mxu1 %v1588_v29  ;;  %1974 = vperm.xlu1 %4280, %v1949_v43   ;;  %v2078_v49 = vld [vmem:[%s5827_s0 + $0x60] sm:$0xff]  ;;  %v1952_v51 = vld [vmem:[%s5828_s6 + $0x28] sm:$0xff]  ;;  %v1953_v52 = vld [vmem:[%s5828_s6 + $0x30] sm:$0xff] }
 0x1a2   : > { %3990 = vmatpush3.msra.mxu1 %v1588_v29  ;;  %1969 = vperm.xlu0 %4279, %v1948_v44   ;;  %v1954_v53 = vld [vmem:[%s5828_s6 + $0x38] sm:$0xff]  ;;  %v1955_v54 = vld [vmem:[%s5828_s6 + $0x40] sm:$0xff]  ;;  %v1956_v55 = vld [vmem:[%s5828_s6 + $0x48] sm:$0xff] }
 0x1a3   : > { %4012 = vmatprep.subr.mxu1 %v5230_v30  ;;  %v1957_v56 = vld [vmem:[%s5828_s6 + $0x50] sm:$0xff]  ;;  %v1958_v57 = vld [vmem:[%s5828_s6 + $0x58] sm:$0xff]  ;;  %v1959_v58 = vld [vmem:[%s5828_s6 + $0x60] sm:$0xff] }
 0x1a4   : > { %v1960_v59 = vld [vmem:[%s5828_s6 + $0x68] sm:$0xff]  ;;  %v2694_v60 = vld [vmem:[%s5829_s9 + $0x60] sm:$0xff]  ;;  %v2692_v62 = vld [vmem:[%s5829_s9 + $0x50] sm:$0xff]  ;;  %s5830_s6 = sld [smem:[#allocation49_spill]] }
 0x1a5   : > { %1979 = vperm.xlu1 %4280, %v1950_v47   ;;  %v2695_v61 = vld [vmem:[%s5829_s9 + $0x68] sm:$0xff]  ;;  %v2693_v63 = vld [vmem:[%s5829_s9 + $0x58] sm:$0xff]  ;;  %v2690_v0 = vld [vmem:[%s5829_s9 + $0x40] sm:$0xff] }
 0x1a6   : > { %1984 = vperm.xlu0 %4279, %v1951_v48   ;;  %v2691_v1 = vld [vmem:[%s5829_s9 + $0x48] sm:$0xff]  ;;  %v2688_v2 = vld [vmem:[%s5829_s9 + $0x30] sm:$0xff]  ;;  %v2689_v3 = vld [vmem:[%s5829_s9 + $0x38] sm:$0xff] }
 0x1a7   : > { %3960 = vmatmul.mubr.msk.bf16.gmra.mxu0 %vm1396_vm3, %v5191_v14  ;;  %v2686_v4 = vld [vmem:[%s5829_s9 + $0x20] sm:$0xff]  ;;  %v2687_v5 = vld [vmem:[%s5829_s9 + $0x28] sm:$0xff]  ;;  %v2684_v6 = vld [vmem:[%s5829_s9 + $0x10] sm:$0xff] }
 0x1a8   : > { %3963 = vmatprep.mubr.msk.bf16.mxu0 %vm1396_vm3, %v5194_v15  ;;  %v2685_v7 = vld [vmem:[%s5829_s9 + $0x18] sm:$0xff]  ;;  %v2682_v8 = vld [vmem:[%s5829_s9] sm:$0xff] }
 0x1a9   : > { %1989 = vperm.xlu1 %4280, %v1952_v51  }
 0x1aa   : > { %1994 = vperm.xlu0 %4279, %v1953_v52   ;;  %s5831_s12 = scalar_lea.vmem %s5830_s6, %s5115_s4 }
 0x1ad   : > { %1999 = vperm.xlu1 %4280, %v1954_v53  }
 0x1ae   : > { %2004 = vperm.xlu0 %4279, %v1955_v54  }
 0x1af   : > { %3964 = vmatmul.mubr.msk.bf16.gmra.mxu0 %vm1396_vm3, %v5201_v16 }
 0x1b0   : > { %3967 = vmatprep.mubr.msk.bf16.mxu0 %vm1396_vm3, %v5204_v17 }
 0x1b1   : > { %2009 = vperm.xlu1 %4280, %v1956_v55  }
 0x1b2   : > { %2014 = vperm.xlu0 %4279, %v1957_v56  }
 0x1b5   : > { %2019 = vperm.xlu1 %4280, %v1958_v57  }
 0x1b6   : > { %2024 = vperm.xlu0 %4279, %v1959_v58  }
 0x1b7   : > { %3968 = vmatmul.mubr.msk.bf16.gmra.mxu0 %vm1396_vm3, %v4288_v18  ;;  %v2683_v18 = vld [vmem:[%s5829_s9 + $0x8] sm:$0xff]  ;;  %s4697_s9 = smov [#allocation11]  }
 0x1b8   : > { %3971 = vmatprep.mubr.msk.bf16.mxu0 %vm1396_vm3, %v4289_v19 }
 0x1b9   : > { %2029 = vperm.xlu1 %4280, %v1960_v59  }
 0x1ba   : > { %2758 = vperm.xlu0 %4279, %v2694_v60  }
 0x1bd   : > { %2763 = vperm.xlu1 %4280, %v2695_v61  }
 0x1be   : > { %2748 = vperm.xlu0 %4279, %v2692_v62  }
 0x1bf   : > { %3972 = vmatmul.mubr.msk.bf16.gmra.mxu0 %vm1396_vm3, %v4290_v20 }
 0x1c0   : > { %3975 = vmatprep.mubr.msk.bf16.mxu0 %vm1396_vm3, %v4291_v21 }
 0x1c1   : > { %2753 = vperm.xlu1 %4280, %v2693_v63  }
 0x1c2   : > { %2738 = vperm.xlu0 %4279, %v2690_v0  }
 0x1c5   : > { %2743 = vperm.xlu1 %4280, %v2691_v1  }
 0x1c6   : > { %2728 = vperm.xlu0 %4279, %v2688_v2   ;;  %v5380_v2 = vld [vmem:[%s5831_s12] ss:$0 sm:$0xff] }
 0x1c7   : > { %3976 = vmatmul.mubr.msk.bf16.gmra.mxu0 %vm1396_vm3, %v4292_v22 }
 0x1c8   : > { %3979 = vmatprep.mubr.msk.bf16.mxu0 %vm1396_vm3, %v4293_v23 }
 0x1c9   : > { %2733 = vperm.xlu1 %4280, %v2689_v3  }
 0x1ca   : > { %2718 = vperm.xlu0 %4279, %v2686_v4  }
 0x1cd   : > { %2723 = vperm.xlu1 %4280, %v2687_v5  }
 0x1ce   : > { %2708 = vperm.xlu0 %4279, %v2684_v6  }
 0x1cf   : > { %3980 = vmatmul.mubr.msk.bf16.gmra.mxu0 %vm1396_vm3, %v4294_v24 }
 0x1d0   : > { %4043 = vmatprep.mubr.msk.f32.mxu0 %vm2081_vm5, %v2066_v31 }
 0x1d1   : > { %2713 = vperm.xlu1 %4280, %v2685_v7  }
 0x1d2   : > { %2698 = vperm.xlu0 %4279, %v2682_v8  }
 0x1d5   : > { %2703 = vperm.xlu1 %4280, %v2683_v18  }
 0x1d7   : > { %4044 = vmatmul.mubr.msk.f32.vlgmr.msra.gmra.mxu0 %vm2081_vm5, %v2067_v32 }
 0x1d8   : > { %4046 = vmatprep.mubr.msk.f32.mxu0 %vm2081_vm5, %v2068_v33  ;;  %v1586_v33 = vld [vmem:[%s5825_s21 + $0x10] sm:$0xff] }
 0x1db   : > { %4047 = vmatmul.mubr.msk.f32.gmra.mxu0 %vm2081_vm5, %v2069_v34 }
 0x1dc   : > { %4049 = vmatprep.mubr.msk.f32.mxu0 %vm2081_vm5, %v2070_v35  ;;  %v1585_v35 = vld [vmem:[%s5825_s21 + $0x8] sm:$0xff] }
 0x1df   : > { %4050 = vmatmul.mubr.msk.f32.gmra.mxu0 %vm2081_vm5, %v2071_v36 }
 0x1e0   : > { %4052 = vmatprep.mubr.msk.f32.mxu0 %vm2081_vm5, %v2072_v37  ;;  %v1584_v37 = vld [vmem:[%s5825_s21] sm:$0xff] }
 0x1e3   : > { %4053 = vmatmul.mubr.msk.f32.gmra.mxu0 %vm2081_vm5, %v2073_v38 }
 0x1e4   : > { %4055 = vmatprep.mubr.msk.f32.mxu0 %vm2081_vm5, %v2074_v41 }
 0x1e7   : > { %4056 = vmatmul.mubr.msk.f32.gmra.mxu0 %vm2081_vm5, %v2075_v42 }
 0x1e8   : > { %4058 = vmatprep.mubr.msk.f32.mxu0 %vm2081_vm5, %v2076_v45 }
 0x1eb   : > { %4059 = vmatmul.mubr.msk.f32.gmra.mxu0 %vm2081_vm5, %v2077_v46 }
 0x1ec   : > { %4061 = vmatprep.mubr.msk.f32.mxu0 %vm2081_vm5, %v2078_v49 }
 0x1ef   : > { %4062 = vmatmul.mubr.msk.f32.gmra.mxu0 %vm2081_vm5, %v2079_v50 }
 0x1f0   : > { %2794 = vxpose.xlu0.c.b16.start [1/7] (short) (narrow) %v5176_v11, 16 }
 0x1f4   : > { %2795 = vxpose.xlu0.c.b16.cont [2/7] (short) (narrow) %v5181_v12, 16 }
 0x1f8   : > { %2796 = vxpose.xlu0.c.b16.cont [3/7] (short) (narrow) %v5184_v13, 16 }
 0x1fc   : > { %2797 = vxpose.xlu0.c.b16.cont [4/7] (short) (narrow) %v5191_v14, 16  ;;  %v2399_v14 = vld [vmem:[%s5144_s16 + $0x18] sm:$0xff] }
 0x200   : > { %2798 = vxpose.xlu0.c.b16.cont [5/7] (short) (narrow) %v5194_v15, 16  ;;  %v2398_v15 = vld [vmem:[%s5144_s16 + $0x10] sm:$0xff] }
 0x204   : > { %2799 = vxpose.xlu0.c.b16.cont [6/7] (short) (narrow) %v5201_v16, 16  ;;  %v2397_v16 = vld [vmem:[%s5144_s16 + $0x8] sm:$0xff] }
 0x208   : > { %2800 = vxpose.xlu0.c.b16.end [7/7] (short) (narrow) %v5204_v17, 16  ;;  %v2396_v17 = vld [vmem:[%s5144_s16] sm:$0xff]  ;;  %s4561_s16 = sshll.u32 %s4697_s9, 4  ;;  %s4562_s16 = int_to_ptr.vmem [resolvable:$false] %s4561_s16 }
 0x209   : > { %s4563_s21 = scalar_lea.vmem %s4562_s16, 512  ;;  %p4564_p3 = scmp.lt.s32.totalorder %s5611_s30, %s4562_s16 }
 0x20a   : > { %p4565_p0 = scmp.lt.s32.totalorder %s4563_s21, %s4557_s25 }
 0x20c   : > { %p4566_p2 = por %p4565_p0, %p4564_p3 }
 0x20e   : > { %p4567_p4 = pnand %p4566_p2, %p4560_p7 }
 0x219   : > { %v1965_v56 = vpop.permute.xlu0 %1964 }
 0x21c   : > { %v1975_v58 = vpop.permute.xlu1 %1974 }
 0x21d   : > { %v1970_v62 = vpop.permute.xlu0 %1969 }
 0x21e   : > { %v2039_v6 = vmul.f32 %v5380_v2, %v1970_v62 }
 0x220   : > { %v1980_v1 = vpop.permute.xlu1 %1979 }
 0x221   : > { %v1985_v7 = vpop.permute.xlu0 %1984 }
 0x25f   : > { %v5316_v9 = vpop.f32.mrf.mxu0 }
 0x261   : > { %v1473_v10 = vpop.f32.mrf.mxu0 }
 0x263   : > { %v3958_v19 = vpop.f32.mrf.mxu0 }
 0x265   : > { %v1476_v20 = vpop.f32.mrf.mxu0 }
 0x267   : > { %v3961_v21 = vpop.f32.mrf.mxu0 }
 0x269   : > { %v1489_v22 = vpop.f32.mrf.mxu0 }
 0x26b   : > { %v3962_v23 = vpop.f32.mrf.mxu0 }
 0x26d   : > { %v1492_v24 = vpop.f32.mrf.mxu0 }
 0x26f   : > { %v3965_v25 = vpop.f32.mrf.mxu0 }
 0x271   : > { %v1505_v26 = vpop.f32.mrf.mxu0 }
 0x273   : > { %v3966_v27 = vpop.f32.mrf.mxu0 }
 0x275   : > { %v1508_v28 = vpop.f32.mrf.mxu0 }
 0x277   : > { %v3969_v29 = vpop.f32.mrf.mxu0 }
 0x278   : > { %3991 = vmatprep.mubr.msk.f32.mxu1 %vm1592_vm6, %v3969_v29 }
 0x279   : > { %v1521_v31 = vpop.f32.mrf.mxu0 }
 0x27b   : > { %v3970_v32 = vpop.f32.mrf.mxu0 }
 0x27c   : > { %3992 = vmatmul.mubr.msk.f32.vlgmr.msra.gmra.mxu1 %vm1592_vm6, %v3970_v32 }
 0x27d   : > { %v1524_v34 = vpop.f32.mrf.mxu0  ;;  %4013 = vmatpush3.msra.mxu1 %v5230_v30 }
 0x27e   : > { %4014 = vmatprep.subr.mxu1 %v1586_v33 }
 0x27f   : > { %v3973_v36 = vpop.f32.mrf.mxu0  ;;  %4015 = vmatpush3.msra.mxu1 %v1586_v33 }
 0x280   : > { %4016 = vmatprep.subr.mxu1 %v1585_v35 }
 0x281   : > { %v1537_v38 = vpop.f32.mrf.mxu0  ;;  %4017 = vmatpush3.msra.mxu1 %v1585_v35 }
 0x282   : > { %3994 = vmatprep.mubr.msk.f32.mxu1 %vm1592_vm6, %v1537_v38  ;;  %4018 = vmatprep.subr.mxu1 %v1584_v37  ;;  %v2040_v38 = vmul.f32 %v5380_v2, %v1975_v58 }
 0x283   : > { %v3974_v39 = vpop.f32.mrf.mxu0  ;;  %4019 = vmatpush3.msra.mxu1 %v1584_v37 }
 0x284   : > { %4064 = vmatprep.subr.mxu1 %v2399_v14 }
 0x285   : > { %v1540_v40 = vpop.f32.mrf.mxu0 }
 0x286   : > { %3995 = vmatmul.mubr.msk.f32.gmra.mxu1 %vm1592_vm6, %v1540_v40 }
 0x287   : > { %v3977_v30 = vpop.f32.mrf.mxu0  ;;  %3997 = vmatprep.mubr.msk.f32.mxu1 %vm1592_vm6, %v3973_v36 }
 0x289   : > { %v1553_v41 = vpop.f32.mrf.mxu0 }
 0x28a   : > { %3998 = vmatmul.mubr.msk.f32.gmra.mxu1 %vm1592_vm6, %v3974_v39 }
 0x28b   : > { %v3978_v11 = vpop.f32.mrf.mxu0  ;;  %4000 = vmatprep.mubr.msk.f32.mxu1 %vm1592_vm6, %v1553_v41 }
 0x28d   : > { %v1556_v42 = vpop.f32.mrf.mxu0 }
 0x28e   : > { %4001 = vmatmul.mubr.msk.f32.gmra.mxu1 %vm1592_vm6, %v1556_v42  ;;  %v2042_v42 = vmul.f32 %v5380_v2, %v1985_v7 }
 0x28f   : > { %v3981_v12 = vpop.f32.mrf.mxu0  ;;  %4003 = vmatprep.mubr.msk.f32.mxu1 %vm1592_vm6, %v3977_v30 }
 0x291   : > { %v1569_v43 = vpop.f32.mrf.mxu0 }
 0x292   : > { %4004 = vmatmul.mubr.msk.f32.gmra.mxu1 %vm1592_vm6, %v3978_v11 }
 0x293   : > { %v3982_v13 = vpop.f32.mrf.mxu0  ;;  %4006 = vmatprep.mubr.msk.f32.mxu1 %vm1592_vm6, %v1569_v43 }
 0x295   : > { %v1572_v44 = vpop.f32.mrf.mxu0 }
 0x296   : > { %4007 = vmatmul.mubr.msk.f32.gmra.mxu1 %vm1592_vm6, %v1572_v44 }
 0x297   : > { %4009 = vmatprep.mubr.msk.f32.mxu1 %vm1592_vm6, %v3981_v12  ;;  %v4045_v49 = vpop.f32.mrf.mxu0 }
 0x299   : > { %v2194_v52 = vpop.f32.mrf.mxu0 }
 0x29a   : > { %4010 = vmatmul.mubr.msk.f32.gmra.mxu1 %vm1592_vm6, %v3982_v13 }
 0x29b   : > { %4020 = vmatprep.mubr.msk.f32.mxu1 %vm1592_vm6, %v1473_v10  ;;  %v4048_v55 = vpop.f32.mrf.mxu0 }
 0x29d   : > { %v2204_v60 = vpop.f32.mrf.mxu0 }
 0x29e   : > { %4021 = vmatmul.mubr.msk.f32.vlgmr.msra.gmra.mxu1 %vm1592_vm6, %v1476_v20  ;;  %v2038_v20 = vmul.f32 %v5380_v2, %v1965_v56 }
 0x29f   : > { %4023 = vmatprep.mubr.msk.f32.mxu1 %vm1592_vm6, %v5316_v9  ;;  %4065 = vmatpush3.msra.mxu1 %v2399_v14  ;;  %v4051_v0 = vpop.f32.mrf.mxu0  ;;  %v1990_v9 = vpop.permute.xlu1 %1989 }
 0x2a0   : > { %4066 = vmatprep.subr.mxu1 %v2398_v15  ;;  %v2043_v12 = vmul.f32 %v5380_v2, %v1990_v9 }
 0x2a1   : > { %4067 = vmatpush3.msra.mxu1 %v2398_v15  ;;  %v2214_v5 = vpop.f32.mrf.mxu0 }
 0x2a2   : > { %4024 = vmatmul.mubr.msk.f32.gmra.mxu1 %vm1592_vm6, %v3958_v19  ;;  %4068 = vmatprep.subr.mxu1 %v2397_v16 }
 0x2a3   : > { %4026 = vmatprep.mubr.msk.f32.mxu1 %vm1592_vm6, %v1489_v22  ;;  %4069 = vmatpush3.msra.mxu1 %v2397_v16  ;;  %v4054_v19 = vpop.f32.mrf.mxu0  ;;  %v2000_v33 = vpop.permute.xlu1 %1999 }
 0x2a4   : > { %4070 = vmatprep.subr.mxu1 %v2396_v17 }
 0x2a5   : > { %4071 = vmatpush3.msra.mxu1 %v2396_v17  ;;  %v2224_v32 = vpop.f32.mrf.mxu0 }
 0x2a6   : > { %4027 = vmatmul.mubr.msk.f32.gmra.mxu1 %vm1592_vm6, %v1492_v24  ;;  %v5394_v24 = vld [vmem:[%s1159_s11] ss:$0 sm:$0xff]  ;;  %s5833_s11 = sld [smem:[#allocation34_spill]] }
 0x2a7   : > { %4029 = vmatprep.mubr.msk.f32.mxu1 %vm1592_vm6, %v3961_v21  ;;  %v2041_v21 = vmul.f32 %v5380_v2, %v1980_v1  ;;  %v4057_v44 = vpop.f32.mrf.mxu0 }
 0x2aa   : > { %4030 = vmatmul.mubr.msk.f32.gmra.mxu1 %vm1592_vm6, %v3962_v23 }
 0x2ab   : > { %4032 = vmatprep.mubr.msk.f32.mxu1 %vm1592_vm6, %v1505_v26  ;;  %v1995_v26 = vpop.permute.xlu0 %1994 }
 0x2ac   : > { %v2044_v56 = vmul.f32 %v5380_v2, %v1995_v26 }
 0x2ae   : > { %4033 = vmatmul.mubr.msk.f32.gmra.mxu1 %vm1592_vm6, %v1508_v28 }
 0x2af   : > { %4035 = vmatprep.mubr.msk.f32.mxu1 %vm1592_vm6, %v3965_v25  ;;  %v2005_v14 = vpop.permute.xlu0 %2004 }
 0x2b2   : > { %4036 = vmatmul.mubr.msk.f32.gmra.mxu1 %vm1592_vm6, %v3966_v27 }
 0x2b3   : > { %4038 = vmatprep.mubr.msk.f32.mxu1 %vm1592_vm6, %v1521_v31 }
 0x2b6   : > { %4039 = vmatmul.mubr.msk.f32.gmra.mxu1 %vm1592_vm6, %v1524_v34 }
 0x33c   : > { %v3993_v45 = vpop.f32.mrf.mxu1 }
 0x33e   : > { %v1701_v46 = vpop.f32.mrf.mxu1 }
 0x346   : > { %v3996_v47 = vpop.f32.mrf.mxu1 }
 0x348   : > { %v1711_v48 = vpop.f32.mrf.mxu1 }
 0x34a   : > { %v3999_v50 = vpop.f32.mrf.mxu1 }
 0x34c   : > { %v1721_v51 = vpop.f32.mrf.mxu1 }
 0x34e   : > { %v5363_v53 = vpop.f32.mrf.mxu1 }
 0x350   : > { %v5365_v54 = vpop.f32.mrf.mxu1 }
 0x352   : > { %v5367_v57 = vpop.f32.mrf.mxu1 }
 0x354   : > { %v5369_v59 = vpop.f32.mrf.mxu1 }
 0x356   : > { %v5371_v61 = vpop.f32.mrf.mxu1 }
 0x358   : > { %v5373_v63 = vpop.f32.mrf.mxu1 }
 0x35a   : > { %v5382_v3 = vpop.f32.mrf.mxu1 }
 0x35c   : > { %v5384_v4 = vpop.f32.mrf.mxu1 }
 0x35e   : > { %v4022_v8 = vpop.f32.mrf.mxu1 }
 0x35f   : > { %v1884_v10 = vadd.f32 %v4022_v8, %v3993_v45  ;;  %v2045_v45 = vmul.f32 %v5380_v2, %v2000_v33 }
 0x360   : > { %v1878_v18 = vpop.f32.mrf.mxu1 }
 0x361   : > { %v1879_v22 = vadd.f32 %v1878_v18, %v1701_v46  ;;  %v2053_v23 = vadd.f32 %v2039_v6, %v1884_v10  ;;  %v2015_v10 = vpop.permute.xlu0 %2014 }
 0x362   : > { %v4025_v25 = vpop.f32.mrf.mxu1 }
 0x363   : > { %v2264_v27 = vadd.f32 %v4045_v49, %v2053_v23  ;;  %v1894_v28 = vadd.f32 %v4025_v25, %v3996_v47  ;;  %v2052_v29 = vadd.f32 %v2038_v20, %v1879_v22  ;;  %v2010_v49 = vpop.permute.xlu1 %2009 }
 0x364   : > { %v1888_v31 = vpop.f32.mrf.mxu1  ;;  %v2047_v22 = vmul.f32 %v5380_v2, %v2010_v49 }
 0x365   : > { %v5397_v34 = vadd.f32 %v5394_v24, %v2264_v27  ;;  %v2263_v35 = vadd.f32 %v2194_v52, %v2052_v29  ;;  %v1889_v36 = vadd.f32 %v1888_v31, %v1711_v48  ;;  %v2055_v37 = vadd.f32 %v2041_v21, %v1894_v28 }
 0x366   : > { %v4028_v39 = vpop.f32.mrf.mxu1 }
 0x367   : > { %v3769_v40 = vmul.f32 -1.442695, %v5397_v34  ;;  %v5402_v30 = vadd.f32 %v5394_v24, %v2263_v35  ;;  %v2266_v41 = vadd.f32 %v4048_v55, %v2055_v37  ;;  %v1904_v11 = vadd.f32 %v4028_v39, %v3999_v50  ;;  %v2020_v25 = vpop.permute.xlu1 %2019 }
 0x368   : > { %v2054_v43 = vadd.f32 %v2040_v38, %v1889_v36  ;;  %v1898_v13 = vpop.f32.mrf.mxu1 }
 0x369   : > { %4295 = vpow2.f32 %v3769_v40  ;;  %v3768_v15 = vmul.f32 -1.442695, %v5402_v30  ;;  %v5408_v16 = vadd.f32 %v5394_v24, %v2266_v41  ;;  %v1899_v17 = vadd.f32 %v1898_v13, %v1721_v51  ;;  %v2234_v51 = vpop.f32.mrf.mxu0 }
 0x36a   : > { %v2265_v46 = vadd.f32 %v2204_v60, %v2054_v43  ;;  %v2057_v47 = vadd.f32 %v2043_v12, %v1904_v11  ;;  %v4031_v48 = vpop.f32.mrf.mxu1  ;;  %v2048_v43 = vmul.f32 %v5380_v2, %v2015_v10 }
 0x36b   : > { %4297 = vpow2.f32 %v3768_v15  ;;  %v3771_v50 = vmul.f32 -1.442695, %v5408_v16  ;;  %v1914_v52 = vadd.f32 %v4031_v48, %v5363_v53  ;;  %v2056_v55 = vadd.f32 %v2042_v42, %v1899_v17  ;;  %v4060_v23 = vpop.f32.mrf.mxu0  ;;  %v2030_v15 = vpop.permute.xlu1 %2029 }
 0x36c   : > { %v5415_v58 = vadd.f32 %v5394_v24, %v2265_v46  ;;  %v2268_v62 = vadd.f32 %v4051_v0, %v2057_v47  ;;  %v1908_v1 = vpop.f32.mrf.mxu1 }
 0x36d   : > { %4299 = vpow2.f32 %v3771_v50  ;;  %v2267_v6 = vadd.f32 %v2214_v5, %v2056_v55  ;;  %v1909_v60 = vadd.f32 %v1908_v1, %v5365_v54  ;;  %v2059_v7 = vadd.f32 %v2045_v45, %v1914_v52  ;;  %v2244_v40 = vpop.f32.mrf.mxu0 }
 0x36e   : > { %v3770_v8 = vmul.f32 -1.442695, %v5415_v58  ;;  %v5420_v9 = vadd.f32 %v5394_v24, %v2268_v62  ;;  %v4034_v53 = vpop.f32.mrf.mxu1 }
 0x36f   : > { %v5423_v18 = vadd.f32 %v5394_v24, %v2267_v6  ;;  %v2270_v20 = vadd.f32 %v4054_v19, %v2059_v7  ;;  %v1924_v0 = vadd.f32 %v4034_v53, %v5367_v57  ;;  %v2058_v21 = vadd.f32 %v2044_v56, %v1909_v60  ;;  %v4063_v55 = vpop.f32.mrf.mxu0 }
 0x370   : > { %4301 = vpow2.f32 %v3770_v8  ;;  %v3773_v54 = vmul.f32 -1.442695, %v5420_v9  ;;  %v1918_v5 = vpop.f32.mrf.mxu1  ;;  %v2046_v19 = vmul.f32 %v5380_v2, %v2005_v14  ;;  %v2049_v57 = vmul.f32 %v5380_v2, %v2020_v25 }
 0x371   : > { %v3772_v26 = vmul.f32 -1.442695, %v5423_v18  ;;  %v5430_v27 = vadd.f32 %v5394_v24, %v2270_v20  ;;  %v2269_v28 = vadd.f32 %v2224_v32, %v2058_v21  ;;  %v1919_v29 = vadd.f32 %v1918_v5, %v5369_v59  ;;  %v2025_v59 = vpop.permute.xlu0 %2024  ;;  %v2254_v20 = vpop.f32.mrf.mxu0 }
 0x372   : > { %4303 = vpow2.f32 %v3773_v54  ;;  %v2061_v31 = vadd.f32 %v2047_v22, %v1924_v0  ;;  %v4037_v33 = vpop.f32.mrf.mxu1  ;;  %v2050_v13 = vmul.f32 %v5380_v2, %v2025_v59 }
 0x373   : > { %4305 = vpow2.f32 %v3772_v26  ;;  %v3775_v35 = vmul.f32 -1.442695, %v5430_v27  ;;  %v5437_v36 = vadd.f32 %v5394_v24, %v2269_v28  ;;  %v1934_v37 = vadd.f32 %v4037_v33, %v5371_v61 }
 0x374   : > { %v2272_v38 = vadd.f32 %v4057_v44, %v2061_v31  ;;  %v2060_v39 = vadd.f32 %v2046_v19, %v1919_v29  ;;  %v1928_v32 = vpop.f32.mrf.mxu1 }
 0x375   : > { %4307 = vpow2.f32 %v3775_v35  ;;  %v3774_v41 = vmul.f32 -1.442695, %v5437_v36  ;;  %v1929_v11 = vadd.f32 %v1928_v32, %v5373_v63  ;;  %v2063_v42 = vadd.f32 %v2049_v57, %v1934_v37 }
 0x376   : > { %v4296_v12 = vpop.eup %4295  ;;  %v5445_v14 = vadd.f32 %v5394_v24, %v2272_v38  ;;  %v2271_v61 = vadd.f32 %v2234_v51, %v2060_v39  ;;  %v4040_v44 = vpop.f32.mrf.mxu1  ;;  %v2051_v63 = vmul.f32 %v5380_v2, %v2030_v15 }
 0x377   : > { %v2341_v17 = vadd.f32 1.0, %v4296_v12  ;;  %4309 = vpow2.f32 %v3774_v41  ;;  %v2274_v45 = vadd.f32 %v4060_v23, %v2063_v42  ;;  %v1944_v46 = vadd.f32 %v4040_v44, %v5382_v3 }
 0x378   : > { %v4298_v47 = vpop.eup %4297  ;;  %v3777_v48 = vmul.f32 -1.442695, %v5445_v14  ;;  %v5451_v49 = vadd.f32 %v5394_v24, %v2271_v61  ;;  %v2062_v50 = vadd.f32 %v2048_v43, %v1929_v11  ;;  %v1938_v52 = vpop.f32.mrf.mxu1 }
 0x379   : > { %4311 = vrcp.f32 %v2341_v17  ;;  %v2340_v56 = vadd.f32 1.0, %v4298_v47  ;;  %v5454_v62 = vadd.f32 %v5394_v24, %v2274_v45  ;;  %v1939_v1 = vadd.f32 %v1938_v52, %v5384_v4 }
 0x37a   : > { %v4300_v51 = vpop.eup %4299  ;;  %4313 = vpow2.f32 %v3777_v48  ;;  %v3776_v3 = vmul.f32 -1.442695, %v5451_v49  ;;  %v2273_v2 = vadd.f32 %v2244_v40, %v2062_v50  ;;  %v2065_v6 = vadd.f32 %v2051_v63, %v1944_v46 }
 0x37b   : > { %4315 = vrcp.f32 %v2340_v56  ;;  %v2343_v60 = vadd.f32 1.0, %v4300_v51  ;;  %v3779_v7 = vmul.f32 -1.442695, %v5454_v62  ;;  %v2064_v8 = vadd.f32 %v2050_v13, %v1939_v1 }
 0x37c   : > { %4317 = vpow2.f32 %v3776_v3  ;;  %v5460_v53 = vadd.f32 %v5394_v24, %v2273_v2  ;;  %v2276_v10 = vadd.f32 %v4063_v55, %v2065_v6  ;;  %v4695_v6 = vmov 0.0  }
 0x37d   : > { %v4302_v0 = vpop.eup %4301  ;;  %v2275_v21 = vadd.f32 %v2254_v20, %v2064_v8  ;;  %4319 = vpow2.f32 %v3779_v7  ;;  %4093 = vmatprep.subr.bf16.mxu0 %v4695_v6  ;;  %4107 = vmatprep.mubr.msk.bf16.mxu0 %vm4696_vm7, %v4695_v6  ;;  %v2860_v7 = vld [vmem:[%s5833_s11 + $0x8] sm:$0xff]  ;;  %v2859_v8 = vld [vmem:[%s5833_s11] sm:$0xff] }
 0x37e   : > { %v2342_v4 = vadd.f32 1.0, %v4302_v0  ;;  %v3778_v22 = vmul.f32 -1.442695, %v5460_v53  ;;  %v5464_v54 = vadd.f32 %v5394_v24, %v2276_v10  ;;  %4321 = vrcp.f32 %v2343_v60  ;;  %v2861_v60 = vld [vmem:[%s5833_s11 + $0x10] sm:$0xff] }
 0x37f   : > { %v4304_v5 = vpop.eup %4303  ;;  %v5467_v23 = vadd.f32 %v5394_v24, %v2275_v21 }
 0x380   : > { %v4306_v25 = vpop.eup %4305  ;;  %4323 = vrcp.f32 %v2342_v4  ;;  %v2345_v26 = vadd.f32 1.0, %v4304_v5  ;;  %v3781_v28 = vmul.f32 -1.442695, %v5464_v54 }
 0x381   : > { %v2344_v29 = vadd.f32 1.0, %v4306_v25  ;;  %4325 = vpow2.f32 %v3778_v22  ;;  %v3780_v57 = vmul.f32 -1.442695, %v5467_v23  ;;  %v3782_v25 = vld [vmem:[%s1175_s7] ss:$0 sm:$0xff]  ;;  %s5835_s7 = sld [smem:[#allocation33_spill]] }
 0x382   : > { %v4308_v19 = vpop.eup %4307  ;;  %4327 = vrcp.f32 %v2345_v26 }
 0x383   : > { %4329 = vrcp.f32 %v2344_v29  ;;  %v2347_v31 = vadd.f32 1.0, %v4308_v19 }
 0x384   : > { %v4310_v33 = vpop.eup %4309  ;;  %4331 = vpow2.f32 %v3781_v28 }
 0x385   : > { %4333 = vrcp.f32 %v2347_v31  ;;  %v2346_v35 = vadd.f32 1.0, %v4310_v33 }
 0x386   : > { %v4312_v37 = vpop.eup %4311  ;;  %4335 = vpow2.f32 %v3780_v57 }
 0x387   : > { %v4314_v24 = vpop.eup %4313  ;;  %4337 = vrcp.f32 %v2346_v35  ;;  %v2383_v59 = vmul.f32 %v4312_v37, %v5397_v34 }
 0x388   : > { %v4316_v38 = vpop.eup %4315  ;;  %v2349_v39 = vadd.f32 1.0, %v4314_v24 }
 0x389   : > { %v4318_v32 = vpop.eup %4317  ;;  %v2382_v40 = vmul.f32 %v4316_v38, %v5402_v30 }
 0x38a   : > { %v2348_v41 = vadd.f32 1.0, %v4318_v32  ;;  %v4320_v11 = vpop.eup %4319  ;;  %4339 = vrcp.f32 %v2349_v39 }
 0x38b   : > { %4072 = vmatprep.mubr.msk.f32.mxu1 %vm1592_vm6, %v2382_v40  ;;  %v4322_v42 = vpop.eup %4321  ;;  %v2351_v12 = vadd.f32 1.0, %v4320_v11 }
 0x38c   : > { %4341 = vrcp.f32 %v2348_v41  ;;  %4073 = vmatmul.mubr.msk.f32.vlgmr.msra.gmra.mxu1 %vm1592_vm6, %v2383_v59  ;;  %v2385_v15 = vmul.f32 %v4322_v42, %v5408_v16 }
 0x38d   : > { %v4324_v43 = vpop.eup %4323  ;;  %4343 = vrcp.f32 %v2351_v12 }
 0x38e   : > { %v4326_v13 = vpop.eup %4325  ;;  %v2384_v61 = vmul.f32 %v4324_v43, %v5415_v58 }
 0x38f   : > { %v4328_v44 = vpop.eup %4327  ;;  %v2350_v30 = vadd.f32 1.0, %v4326_v13 }
 0x390   : > { %v4330_v17 = vpop.eup %4329  ;;  %4075 = vmatprep.mubr.msk.f32.mxu1 %vm1592_vm6, %v2384_v61  ;;  %v2387_v48 = vmul.f32 %v4328_v44, %v5420_v9 }
 0x391   : > { %v4332_v34 = vpop.eup %4331  ;;  %v2386_v45 = vmul.f32 %v4330_v17, %v5423_v18  ;;  %4345 = vrcp.f32 %v2350_v30  ;;  %4076 = vmatmul.mubr.msk.f32.gmra.mxu1 %vm1592_vm6, %v2385_v15 }
 0x392   : > { %v4334_v46 = vpop.eup %4333  ;;  %v2353_v47 = vadd.f32 1.0, %v4332_v34 }
 0x393   : > { %v4336_v63 = vpop.eup %4335  ;;  %4078 = vmatprep.mubr.msk.f32.mxu1 %vm1592_vm6, %v2386_v45  ;;  %v2389_v18 = vmul.f32 %v4334_v46, %v5430_v27 }
 0x394   : > { %v4338_v58 = vpop.eup %4337  ;;  %v2352_v16 = vadd.f32 1.0, %v4336_v63  ;;  %4347 = vrcp.f32 %v2353_v47 }
 0x395   : > { %v2388_v50 = vmul.f32 %v4338_v58, %v5437_v36  ;;  %4079 = vmatmul.mubr.msk.f32.gmra.mxu1 %vm1592_vm6, %v2387_v48 }
 0x396   : > { %4349 = vrcp.f32 %v2352_v16 }
 0x397   : > { %4081 = vmatprep.mubr.msk.f32.mxu1 %vm1592_vm6, %v2388_v50  ;;  %v4340_v52 = vpop.eup %4339 }
 0x398   : > { %v2391_v56 = vmul.f32 %v4340_v52, %v5445_v14 }
 0x399   : > { %v4342_v55 = vpop.eup %4341  ;;  %4082 = vmatmul.mubr.msk.f32.gmra.mxu1 %vm1592_vm6, %v2389_v18 }
 0x39a   : > { %v2390_v9 = vmul.f32 %v4342_v55, %v5451_v49  ;;  %v4344_v1 = vpop.eup %4343 }
 0x39b   : > { %v2393_v51 = vmul.f32 %v4344_v1, %v5454_v62  ;;  %v2862_v62 = vld [vmem:[%s5833_s11 + $0x18] sm:$0xff] }
 0x39c   : > { %4084 = vmatprep.mubr.msk.f32.mxu1 %vm1592_vm6, %v2390_v9  ;;  %4111 = vmatprep.subr.mxu1 %v2862_v62 }
 0x39d   : > { %4085 = vmatmul.mubr.msk.f32.gmra.mxu1 %vm1592_vm6, %v2391_v56 }
 0x39e   : > { %v4346_v36 = vpop.eup %4345  ;;  %4112 = vmatpush3.msra.mxu1 %v2862_v62 }
 0x39f   : > { %v2392_v27 = vmul.f32 %v4346_v36, %v5460_v53  ;;  %4113 = vmatprep.subr.mxu1 %v2861_v60 }
 0x3a0   : > { %4114 = vmatpush3.msra.mxu1 %v2861_v60  ;;  %v2764_v60 = vpop.permute.xlu1 %2763 }
 0x3a1   : > { %4087 = vmatprep.mubr.msk.f32.mxu1 %vm1592_vm6, %v2392_v27  ;;  %v4348_v3 = vpop.eup %4347  ;;  %4115 = vmatprep.subr.mxu1 %v2860_v7 }
 0x3a2   : > { %4088 = vmatmul.mubr.msk.f32.gmra.mxu1 %vm1592_vm6, %v2393_v51  ;;  %v2395_v2 = vmul.f32 %v4348_v3, %v5464_v54 }
 0x3a3   : > { %v4350_v49 = vpop.eup %4349  ;;  %4116 = vmatpush3.msra.mxu1 %v2860_v7 }
 0x3a4   : > { %v2394_v14 = vmul.f32 %v4350_v49, %v5467_v23  ;;  %4117 = vmatprep.subr.mxu1 %v2859_v8 }
 0x3a5   : > { %4118 = vmatpush3.msra.mxu1 %v2859_v8 }
 0x3a6   : > { %4090 = vmatprep.mubr.msk.f32.mxu1 %vm1592_vm6, %v2394_v14  ;;  %v2759_v14 = vpop.permute.xlu0 %2758 }
 0x3a7   : > { %4091 = vmatmul.mubr.msk.f32.gmra.mxu1 %vm1592_vm6, %v2395_v2 }
 0x44c   : > { %v4074_v53 = vpop.f32.mrf.mxu1 }
 0x44d   : > { %v5538_v44 = vadd.f32 %v4074_v53, %v3782_v25 }
 0x44e   : > { %v2515_v10 = vpop.f32.mrf.mxu1 }
 0x44f   : > { %v5543_v17 = vadd.f32 %v3782_v25, %v2515_v10  ;;  %v3798_v46 = vmul.f32 -1.442695, %v5538_v44 }
 0x451   : > { %v4077_v20 = vpop.f32.mrf.mxu1  ;;  %v3797_v48 = vmul.f32 -1.442695, %v5543_v17 }
 0x452   : > { %v5545_v34 = vadd.f32 %v4077_v20, %v3782_v25 }
 0x453   : > { %v2525_v0 = vpop.f32.mrf.mxu1 }
 0x454   : > { %v5540_v15 = vadd.f32 %v3782_v25, %v2525_v0  ;;  %v3800_v16 = vmul.f32 -1.442695, %v5545_v34  ;;  %v2749_v0 = vpop.permute.xlu0 %2748 }
 0x455   : > { %v4080_v21 = vpop.f32.mrf.mxu1 }
 0x456   : > { %v5535_v13 = vadd.f32 %v4080_v21, %v3782_v25  ;;  %v3799_v47 = vmul.f32 -1.442695, %v5540_v15 }
 0x457   : > { %v2535_v4 = vpop.f32.mrf.mxu1 }
 0x458   : > { %v5532_v12 = vadd.f32 %v3782_v25, %v2535_v4  ;;  %v3802_v45 = vmul.f32 -1.442695, %v5535_v13 }
 0x459   : > { %v4083_v22 = vpop.f32.mrf.mxu1 }
 0x45a   : > { %v5529_v11 = vadd.f32 %v4083_v22, %v3782_v25  ;;  %v3801_v30 = vmul.f32 -1.442695, %v5532_v12 }
 0x45b   : > { %v2545_v54 = vpop.f32.mrf.mxu1 }
 0x45c   : > { %v5523_v39 = vadd.f32 %v3782_v25, %v2545_v54  ;;  %v3804_v61 = vmul.f32 -1.442695, %v5529_v11  ;;  %v2754_v54 = vpop.permute.xlu1 %2753 }
 0x45d   : > { %v4086_v5 = vpop.f32.mrf.mxu1 }
 0x45e   : > { %v5516_v31 = vadd.f32 %v4086_v5, %v3782_v25  ;;  %v3803_v43 = vmul.f32 -1.442695, %v5523_v39 }
 0x45f   : > { %v2555_v23 = vpop.f32.mrf.mxu1 }
 0x460   : > { %v5512_v29 = vadd.f32 %v3782_v25, %v2555_v23  ;;  %v3806_v40 = vmul.f32 -1.442695, %v5516_v31 }
 0x462   : > { %v4089_v26 = vpop.f32.mrf.mxu1  ;;  %v3805_v24 = vmul.f32 -1.442695, %v5512_v29 }
 0x463   : > { %v5510_v28 = vadd.f32 %v4089_v26, %v3782_v25 }
 0x464   : > { %v2565_v19 = vpop.f32.mrf.mxu1 }
 0x465   : > { %v5514_v57 = vadd.f32 %v3782_v25, %v2565_v19  ;;  %v3808_v33 = vmul.f32 -1.442695, %v5510_v28 }
 0x467   : > { %v3807_v35 = vmul.f32 -1.442695, %v5514_v57  ;;  %v4092_v37 = vpop.f32.mrf.mxu1 }
 0x468   : > { %v5521_v38 = vadd.f32 %v4092_v37, %v3782_v25  ;;  %v2739_v37 = vpop.permute.xlu0 %2738 }
 0x469   : > { %4351 = vpow2.f32 %v3807_v35  ;;  %v2575_v32 = vpop.f32.mrf.mxu1 }
 0x46a   : > { %4353 = vpow2.f32 %v3808_v33  ;;  %v3810_v59 = vmul.f32 -1.442695, %v5521_v38  ;;  %v5527_v41 = vadd.f32 %v3782_v25, %v2575_v32 }
 0x46b   : > { %4355 = vpow2.f32 %v3805_v24 }
 0x46c   : > { %v3809_v42 = vmul.f32 -1.442695, %v5527_v41  ;;  %4357 = vpow2.f32 %v3810_v59 }
 0x46d   : > { %4359 = vpow2.f32 %v3806_v40 }
 0x46e   : > { %4361 = vpow2.f32 %v3809_v42  ;;  %v2744_v42 = vpop.permute.xlu1 %2743 }
 0x46f   : > { %4363 = vpow2.f32 %v3803_v43 }
 0x470   : > { %4365 = vpow2.f32 %v3804_v61 }
 0x471   : > { %4367 = vpow2.f32 %v3801_v30 }
 0x472   : > { %4369 = vpow2.f32 %v3802_v45 }
 0x473   : > { %4371 = vpow2.f32 %v3798_v46 }
 0x474   : > { %4373 = vpow2.f32 %v3799_v47 }
 0x475   : > { %4375 = vpow2.f32 %v3797_v48 }
 0x476   : > { %v4352_v63 = vpop.eup %4351  ;;  %4377 = vpow2.f32 %v3800_v16 }
 0x477   : > { %v4354_v58 = vpop.eup %4353  ;;  %v2636_v50 = vadd.f32 1.0, %v4352_v63 }
 0x478   : > { %v4356_v18 = vpop.eup %4355  ;;  %v2637_v55 = vadd.f32 1.0, %v4354_v58  ;;  %v2729_v58 = vpop.permute.xlu0 %2728 }
 0x479   : > { %v4358_v52 = vpop.eup %4357  ;;  %4379 = vrcp.f32 %v2636_v50  ;;  %v2634_v36 = vadd.f32 1.0, %v4356_v18  ;;  %v2734_v50 = vpop.permute.xlu1 %2733 }
 0x47a   : > { %v4360_v9 = vpop.eup %4359  ;;  %v2639_v56 = vadd.f32 1.0, %v4358_v52 }
 0x47b   : > { %v4362_v1 = vpop.eup %4361  ;;  %v2635_v3 = vadd.f32 1.0, %v4360_v9 }
 0x47c   : > { %4381 = vrcp.f32 %v2639_v56  ;;  %v2638_v27 = vadd.f32 1.0, %v4362_v1  ;;  %v4364_v51 = vpop.eup %4363  ;;  %v2719_v1 = vpop.permute.xlu0 %2718 }
 0x47d   : > { %4383 = vrcp.f32 %v2637_v55  ;;  %v4366_v49 = vpop.eup %4365  ;;  %v2632_v2 = vadd.f32 1.0, %v4364_v51 }
 0x47e   : > { %4385 = vrcp.f32 %v2638_v27  ;;  %v4368_v62 = vpop.eup %4367  ;;  %v2633_v7 = vadd.f32 1.0, %v4366_v49 }
 0x47f   : > { %4387 = vrcp.f32 %v2634_v36  ;;  %v4370_v8 = vpop.eup %4369  ;;  %v2630_v10 = vadd.f32 1.0, %v4368_v62 }
 0x480   : > { %4389 = vrcp.f32 %v2635_v3  ;;  %v4372_v53 = vpop.eup %4371  ;;  %v2631_v4 = vadd.f32 1.0, %v4370_v8  ;;  %v2724_v3 = vpop.permute.xlu1 %2723 }
 0x481   : > { %4391 = vrcp.f32 %v2632_v2  ;;  %v4374_v20 = vpop.eup %4373  ;;  %v2627_v43 = vadd.f32 1.0, %v4372_v53 }
 0x482   : > { %v4376_v21 = vpop.eup %4375  ;;  %4393 = vrcp.f32 %v2633_v7  ;;  %v2628_v23 = vadd.f32 1.0, %v4374_v20  ;;  %v2709_v7 = vpop.permute.xlu0 %2708 }
 0x483   : > { %v4378_v22 = vpop.eup %4377  ;;  %4395 = vrcp.f32 %v2630_v10  ;;  %v2626_v24 = vadd.f32 1.0, %v4376_v21 }
 0x484   : > { %v2629_v19 = vadd.f32 1.0, %v4378_v22  ;;  %4397 = vrcp.f32 %v2631_v4  ;;  %v2714_v10 = vpop.permute.xlu1 %2713 }
 0x485   : > { %4399 = vrcp.f32 %v2628_v23  ;;  %v2858_v23 = vld [vmem:[%s5835_s7 + $0x18] sm:$0xff] }
 0x486   : > { %v4380_v5 = vpop.eup %4379  ;;  %4401 = vrcp.f32 %v2629_v19  ;;  %v2699_v4 = vpop.permute.xlu0 %2698  ;;  %v2855_v19 = vld [vmem:[%s5835_s7] sm:$0xff] }
 0x487   : > { %v2678_v32 = vmul.f32 %v4380_v5, %v5514_v57  ;;  %4403 = vrcp.f32 %v2626_v24 }
 0x488   : > { %4405 = vrcp.f32 %v2627_v43  ;;  %v3142_v43 = vld [vmem:[%s5836_s14 + $0x18] sm:$0xff] }
 0x489   : > { %v4382_v25 = vpop.eup %4381  ;;  %v2776_v47 = vmul.f32 %v2749_v0, %v2678_v32  ;;  %v3025_v32 = vld [vmem:[%s5095_s29] sm:$0xff] }
 0x48a   : > { %v4384_v26 = vpop.eup %4383  ;;  %v2681_v33 = vmul.f32 %v4382_v25, %v5521_v38  ;;  %v2857_v25 = vld [vmem:[%s5835_s7 + $0x10] sm:$0xff] }
 0x48b   : > { %v4386_v35 = vpop.eup %4385  ;;  %v2679_v61 = vmul.f32 %v4384_v26, %v5510_v28  ;;  %v5575_v26 = vld [vmem:[%s5164_s23] sm:$0xff] }
 0x48c   : > { %v2680_v40 = vmul.f32 %v4386_v35, %v5527_v41  ;;  %v4388_v59 = vpop.eup %4387  ;;  %v2779_v30 = vmul.f32 %v2764_v60, %v2681_v33  ;;  %v5582_v33 = vld [vmem:[%s5164_s23 + $0x8] sm:$0xff] }
 0x48d   : > { %v4390_v46 = vpop.eup %4389  ;;  %v2676_v38 = vmul.f32 %v4388_v59, %v5512_v29  ;;  %v2777_v41 = vmul.f32 %v2754_v54, %v2679_v61  ;;  %v2704_v54 = vpop.permute.xlu1 %2703  ;;  %v3027_v35 = vld [vmem:[%s5158_s18] sm:$0xf]  ;;  %v3141_v61 = vld [vmem:[%s5836_s14 + $0x10] sm:$0xff] }
 0x48e   : > { %v2778_v45 = vmul.f32 %v2759_v14, %v2680_v40  ;;  %v4392_v48 = vpop.eup %4391  ;;  %v2677_v57 = vmul.f32 %v4390_v46, %v5516_v31  ;;  %4133 = vmatprep.subr.msk.mxu1 %vm3035_vm9, %v3027_v35 }
 0x48f   : > { %v4394_v16 = vpop.eup %4393  ;;  %v2674_v28 = vmul.f32 %v4392_v48, %v5523_v39  ;;  %v2774_v18 = vmul.f32 %v2739_v37, %v2676_v38  ;;  %v2785_v52 = vpack.c.bf16 %v2777_v41, %v2776_v47 }
 0x490   : > { %v2786_v63 = vpack.c.bf16 %v2779_v30, %v2778_v45  ;;  %v4396_v55 = vpop.eup %4395  ;;  %v2675_v29 = vmul.f32 %v4394_v16, %v5529_v11  ;;  %v2775_v9 = vmul.f32 %v2744_v42, %v2677_v57  ;;  %v3026_v42 = vld [vmem:[%s5095_s29 + $0x8] sm:$0xff]  ;;  %v3139_v45 = vld [vmem:[%s5836_s14] sm:$0xff] }
 0x491   : > { %v4398_v56 = vpop.eup %4397  ;;  %v2672_v31 = vmul.f32 %v4396_v55, %v5532_v12  ;;  %v2772_v36 = vmul.f32 %v2729_v58, %v2674_v28  ;;  %v3140_v30 = vld [vmem:[%s5836_s14 + $0x8] sm:$0xff]  ;;  %v3819_v57 = vld [vmem:[%s1190_s10] ss:$0 sm:$0xff]  ;;  %s3831_s10 = sshll.u32 %s5838_s27, 8 }
 0x492   : > { %4094 = vmatpush3.bf16.msra.mxu0 %v2786_v63  ;;  %v2784_v27 = vpack.c.bf16 %v2775_v9, %v2774_v18  ;;  %v4400_v51 = vpop.eup %4399  ;;  %v2673_v49 = vmul.f32 %v4398_v56, %v5535_v13  ;;  %v2773_v39 = vmul.f32 %v2734_v50, %v2675_v29  ;;  %s5609_s24 = scalar_lea.hbm %s5840_s2, %s3831_s10 }
 0x493   : > { %4095 = vmatprep.subr.bf16.mxu0 %v4695_v6  ;;  %v4402_v14 = vpop.eup %4401  ;;  %v2670_v11 = vmul.f32 %v4400_v51, %v5540_v15  ;;  %v2770_v2 = vmul.f32 %v2719_v1, %v2672_v31 }
 0x494   : > { %v2783_v62 = vpack.c.bf16 %v2773_v39, %v2772_v36  ;;  %v4404_v60 = vpop.eup %4403  ;;  %v2671_v8 = vmul.f32 %v4402_v14, %v5545_v34  ;;  %v2771_v12 = vmul.f32 %v2724_v3, %v2673_v49  ;;  %v3822_v49 = vld [vmem:[%s5162_s26] ss:$0 sm:$0xff]  ;;  %s3236_s26 = scalar_lea.sflag [#allocation4], %s5061_s13 }
 0x495   : > { %v4406_v53 = vpop.eup %4405  ;;  %v2668_v13 = vmul.f32 %v4404_v60, %v5543_v17  ;;  %v2768_v20 = vmul.f32 %v2709_v7, %v2670_v11 }
 0x496   : > { %4096 = vmatpush3.bf16.msra.mxu0 %v2785_v52  ;;  %v2782_v0 = vpack.c.bf16 %v2771_v12, %v2770_v2  ;;  %v2669_v21 = vmul.f32 %v4406_v53, %v5538_v44  ;;  %v2769_v15 = vmul.f32 %v2714_v10, %v2671_v8  ;;  %v2802_v44 = vpop.trf.xlu0 }
 0x497   : > { %4097 = vmatprep.subr.bf16.mxu0 %v4695_v6  ;;  %v2766_v34 = vmul.f32 %v2699_v4, %v2668_v13 }
 0x498   : > { %v2781_v22 = vpack.c.bf16 %v2769_v15, %v2768_v20  ;;  %v2767_v5 = vmul.f32 %v2704_v54, %v2669_v21 }
 0x49a   : > { %4098 = vmatpush3.bf16.msra.mxu0 %v2784_v27  ;;  %v2780_v17 = vpack.c.bf16 %v2767_v5, %v2766_v34 }
 0x49b   : > { %4099 = vmatprep.subr.bf16.mxu0 %v4695_v6 }
 0x49e   : > { %4100 = vmatpush3.bf16.msra.mxu0 %v2783_v62 }
 0x49f   : > { %4101 = vmatprep.subr.bf16.mxu0 %v4695_v6 }
 0x4a2   : > { %4102 = vmatpush3.bf16.msra.mxu0 %v2782_v0 }
 0x4a3   : > { %4103 = vmatprep.subr.bf16.mxu0 %v4695_v6 }
 0x4a6   : > { %4104 = vmatpush3.bf16.msra.mxu0 %v2781_v22 }
 0x4a7   : > { %4105 = vmatprep.subr.bf16.mxu0 %v4695_v6  ;;  %v2856_v6 = vld [vmem:[%s5835_s7 + $0x8] sm:$0xff] }
 0x4aa   : > { %4106 = vmatpush3.bf16.msra.mxu0 %v2780_v17 }
 0x4ab   : > { %4122 = vmatprep.subr.mxu0 %v2858_v23 }
 0x4ad   : > { %4108 = vmatmul.mubr.msk.bf16.vlgmr.msra.gmra.mxu0 %vm2810_vm8, %v2802_v44 }
 0x4ae   : > { %4123 = vmatpush3.msra.mxu0 %v2858_v23  ;;  %4130 = vmatprep.mubr.msk.f32.mxu0 %vm1592_vm6, %v5575_v26 }
 0x4af   : > { %4124 = vmatprep.subr.mxu0 %v2857_v25 }
 0x4b0   : > { %4125 = vmatpush3.msra.mxu0 %v2857_v25 }
 0x4b1   : > { %4126 = vmatprep.subr.mxu0 %v2856_v6 }
 0x4b2   : > { %4127 = vmatpush3.msra.mxu0 %v2856_v6 }
 0x4b3   : > { %4128 = vmatprep.subr.mxu0 %v2855_v19 }
 0x4b4   : > { %4129 = vmatpush3.msra.mxu0 %v2855_v19 }
 0x4b5   : > { %4131 = vmatmul.mubr.msk.f32.vlgmr.msra.gmra.mxu0 %vm1592_vm6, %v5582_v33  ;;  %4138 = vmatprep.subr.mxu0 %v3142_v43 }
 0x4b6   : > { %4139 = vmatpush3.msra.mxu0 %v3142_v43 }
 0x4b7   : > { %4140 = vmatprep.subr.mxu0 %v3141_v61 }
 0x4b8   : > { %4141 = vmatpush3.msra.mxu0 %v3141_v61 }
 0x4b9   : > { %4142 = vmatprep.subr.mxu0 %v3140_v30 }
 0x4ba   : > { %4143 = vmatpush3.msra.mxu0 %v3140_v30 }
 0x4bb   : > { %4144 = vmatprep.subr.mxu0 %v3139_v45 }
 0x4bc   : > { %4145 = vmatpush3.msra.mxu0 %v3139_v45 }
 0x56d   : > { %v2848_v37 = vpop.f32.mrf.mxu0 }
 0x56e   : > { %4119 = vmatprep.mubr.msk.f32.mxu1 %vm1592_vm6, %v2848_v37 }
 0x56f   : > { %v4109_v24 = vpop.f32.mrf.mxu0 }
 0x571   : > { %v2851_v40 = vpop.f32.mrf.mxu0 }
 0x572   : > { %4120 = vmatmul.mubr.msk.f32.vlgmr.msra.gmra.mxu1 %vm1592_vm6, %v2851_v40 }
 0x573   : > { %v4110_v59 = vpop.f32.mrf.mxu0  ;;  %4134 = vmatpush3.msk.msra.mxu1 %vm3035_vm9, %v3027_v35  ;;  %4135 = vmatprep.mubr.msk.f32.mxu1 %vm3028_vm10, %v3025_v32 }
 0x575   : > { %v4132_v46 = vpop.f32.mrf.mxu0 }
 0x576   : > { %4136 = vmatmul.mubr.msk.f32.vlgmr.msra.gmra.mxu1 %vm3028_vm10, %v3026_v42 }
 0x577   : > { %v3016_v63 = vpop.f32.mrf.mxu0 }
 0x632   : > { %v4121_v38 = vpop.f32.mrf.mxu1 }
 0x633   : > { %v3022_v48 = vadd.f32 %v4132_v46, %v4121_v38 }
 0x634   : > { %v2935_v47 = vpop.f32.mrf.mxu1 }
 0x635   : > { %v3017_v41 = vadd.f32 %v3016_v63, %v2935_v47 }
 0x636   : > { %v4137_v58 = vpop.f32.mrf.mxu1 }
 0x637   : > { %v3115_v16 = vadd.f32 %v4137_v58, %v3022_v48 }
 0x638   : > { %v3105_v50 = vpop.f32.mrf.mxu1 }
 0x639   : > { %v3124_v28 = vadd.f32 %v3819_v57, %v3115_v16  ;;  %v3114_v18 = vadd.f32 %v3105_v50, %v3017_v41 }
 0x63b   : > { %v3821_v52 = vmul.f32 -1.442695, %v3124_v28  ;;  %v3123_v55 = vadd.f32 %v3819_v57, %v3114_v18 }
 0x63d   : > { %4407 = vpow2.f32 %v3821_v52  ;;  %v3820_v29 = vmul.f32 -1.442695, %v3123_v55 }
 0x63f   : > { %4409 = vpow2.f32 %v3820_v29 }
 0x64a   : > { %v4408_v9 = vpop.eup %4407 }
 0x64b   : > { %v3132_v56 = vadd.f32 1.0, %v4408_v9 }
 0x64c   : > { %v4410_v1 = vpop.eup %4409 }
 0x64d   : > { %v3131_v31 = vadd.f32 1.0, %v4410_v1  ;;  %4411 = vrcp.f32 %v3132_v56 }
 0x64f   : > { %4413 = vrcp.f32 %v3131_v31 }
 0x65a   : > { %v4412_v36 = vpop.eup %4411 }
 0x65b   : > { %v3138_v3 = vmul.f32 %v4412_v36, %v3124_v28 }
 0x65c   : > { %v4414_v27 = vpop.eup %4413 }
 0x65d   : > { %v3137_v51 = vmul.f32 %v4414_v27, %v3123_v55 }
 0x65f   : > { %4146 = vmatprep.mubr.msk.f32.mxu0 %vm1592_vm6, %v3137_v51 }
 0x660   : > { %4147 = vmatmul.mubr.msk.f32.vlgmr.msra.gmra.mxu0 %vm1592_vm6, %v3138_v3 }
 0x720   : > { %v4148_v39 = vpop.f32.mrf.mxu0 }
 0x721   : > { %v3228_v14 = vadd.f32 %v4148_v39, %v3822_v49 }
 0x722   : > { %v3222_v11 = vpop.f32.mrf.mxu0 }
 0x723   : > { %v3232_v2 = vadd.f32 %v5582_v33, %v3228_v14  ;;  %v3223_v62 = vadd.f32 %v3822_v49, %v3222_v11 }
 0x725   : > { %3234 = vst.msk [vmem:[%s5164_s23 + $0x8] sm:$0xff] %vm1592_vm6, %v3232_v2  ;;  %v3231_v60 = vadd.f32 %v5575_v26, %v3223_v62 }
 0x727   : > { %3233 = vst.msk [vmem:[%s5164_s23] sm:$0xff] %vm1592_vm6, %v3231_v60 }
 0x728   : > { %4570 = shalt.err (!%p4567_p4)
}
 0x729   : > { %s4571_s23 = scalar_lea.hbm %s5609_s24, 256  ;;  %s4575_s19 = scalar_lea.hbm %s5841_s20, 512 }
 0x72a   : > { %p4572_p12 = scmp.ne.s32.totalorder %s5609_s24, %s4571_s23  ;;  %p4576_p5 = scmp.lt.s32.totalorder %s5609_s24, %s5841_s20 }
 0x72b   : > { %p4577_p9 = scmp.lt.s32.totalorder %s4575_s19, %s4571_s23 }
 0x72c   : > { %p4573_p10 = pnand %p4572_p12, %p5002_p11 }
 0x72d   : > { %p4578_p8 = por %p4577_p9, %p4576_p5 }
 0x72e   : > { %p4574_p13 = pneg %p4573_p10 }
 0x730   : > { %p4579_p1 = pnand %p4578_p8, %p4574_p13 }
 0x732   : > { %4582 = shalt.err (!%p4579_p1)
}
 0x733   : > { %s4698_s11 = smov 128   ;;  %s4699_s5 = smov 8  }
 0x734   : > { %4160 = dma.vmem_to_hbm [thread:$0]  (%p5002_p11), %s5611_s30, 256, %s5609_s24, %s3236_s26, %s4698_s11, %s4698_s11, %s4699_s5  }
 0x735 PF: > { %s5842_s15 = sld [smem:[#allocation25_spill]] }
 0x736   : > { %s5843_s28 = sld [smem:[#allocation18_spill]] }
 0x737   : > { %s5844_s7 = sld [smem:[#allocation32_spill]] }
 0x73b   : > { %p4183_p6 = scmp.ge.s32.totalorder %s5842_s15, 2 }
 0x73c   : > { %s3264_s14 = sand.u32 1, %s5843_s28  }
 0x73d   : > { %p5845_p7 = scmp.ne.s32.totalorder %s5844_s7, 0  ;;  %s3265_s29 = scalar_lea.sflag [#allocation4], %s3264_s14 }
 0x73f   : > { %p4179_p3 = pnand %p4183_p6, %p5845_p7 }
 0x741   : > { %p4180_p0 = pneg %p4179_p3 }
 0x743   : > { %4640 = dma.done.wait (%p4180_p0), %s3265_s29, 256  }
 0x744   : > { %4642 = vsyncadd (%p4180_p0), %s3265_s29, 4294967040  ;;  %s42_s4 = sadd.s32 1, %s5842_s15   ;;  %s5846_s1 = sld [smem:[#allocation16_spill]] }
 0x745   : > { %p39_p2 = scmp.ge.s32.totalorder %s42_s4, 10   ;;  %s5847_s22 = sld [smem:[#allocation17_spill]] }
 0x746   : > { %s5848_s23 = sld [smem:[#allocation30_spill]] }
 0x747   : > { %s5849_s24 = sld [smem:[#allocation19_spill]] }
 0x748   : > { %s5850_s2 = sld [smem:[#allocation20_spill]] }
 0x749   : > { %s5851_s25 = sld [smem:[#allocation29_spill]]  ;;  %41 = sbr.rel (!%p39_p2) target bundleno = 35 (0x23), region = 239 }
 0x74a   : > { %s5852_s3 = sld [smem:[#allocation23_spill]] }
 0x74b   : > { %s5853_s26 = sld [smem:[#allocation24_spill]] }
 0x74c   : > { %s5854_s27 = sld [smem:[#allocation26_spill]] }
 0x74d   : > { %s5855_s28 = sld [smem:[#allocation28_spill]] }
 0x74e   :  { %3270 = vsyncpa [#allocation3], 1 }
 0x74f   :  { %3272 = vsyncpa [#allocation3 + $0x1], 1 }
 0x750   :  { %3273 = vsyncpa [#allocation6], 1 }
 0x751   :  { %3275 = vsyncpa [#allocation6 + $0x1], 1 }
 0x752   :  { %3276 = vsyncpa [#allocation9], 1 }
 0x753   :  { %3278 = vsyncpa [#allocation9 + $0x1], 1 }
 0x754   :  { %3279 = vsyncpa [#allocation4], 1 }
 0x755   :  { %3281 = vsyncpa [#allocation4 + $0x1], 1 }

</bundles_post_ra>
